<compile_context>
chip_gen: v7x
topology: tpu7x:2x2x1
jax: 0.10.0
libtpu: 0.0.40
codegen_flags: <defaults>
</compile_context>

<pallas_src>
from functools import partial

import jax
import jax.numpy as jnp
from jax import lax
from jax.experimental import pallas as pl
from jax.experimental.pallas import tpu as pltpu


# --------------------------------------------------------------------------
# Kernel
# --------------------------------------------------------------------------
def _gmp_kernel(lamb_ref, x_ref, o_ref, *, gram_dtype, unrolled_solve):
    # x_ref: (bb, D, N) block of the current sub-batch; o_ref: (bb, 1, N).
    bb, D, N = x_ref.shape
    lamb = lamb_ref[0]  # scalar from SMEM

    # ---- Gram matrices for the sub-batch on the MXU (f32 accumulation). ----
    # Read x at the use site; optionally stream a bf16 copy into the MXU.
    xg = x_ref[...]
    if jnp.dtype(gram_dtype) != xg.dtype:
        xg = xg.astype(gram_dtype)
    K = jnp.einsum("bdn,ben->bde", xg, xg,
                   preferred_element_type=jnp.float32)        # (bb, D, D)

    row_iota = lax.broadcasted_iota(jnp.int32, (1, D, 1), 1)  # row index
    col_iota = lax.broadcasted_iota(jnp.int32, (1, 1, D), 2)  # col index
    eye = (row_iota == col_iota).astype(jnp.float32)          # (1, D, D)

    A = K + lamb * eye                                        # (bb, D, D)
    rhs = jnp.ones((bb, D, 1), jnp.float32)                   # (bb, D, 1)

    # ---- Solve A alpha = 1 via Gauss-Jordan elimination.  A is SPD with
    # pivots bounded below by lamb, so no pivoting is needed. ----
    if unrolled_solve:
        # k is a Python int: pivot row / column extraction are plain static
        # slices, keeping the XLU out of the serial elimination chain.
        for k in range(D):
            row_k = A[:, k:k + 1, :]                          # (bb, 1, D)
            rhs_k = rhs[:, k:k + 1, :]                        # (bb, 1, 1)
            inv_p = 1.0 / row_k[:, :, k:k + 1]                # (bb, 1, 1)
            norm_row = row_k * inv_p                          # (bb, 1, D)
            norm_rhs = rhs_k * inv_p                          # (bb, 1, 1)
            # Rank-1 update that normalizes row k and eliminates column k:
            #   c = A[:, :, k] - e_k
            e_k = (row_iota == k).astype(jnp.float32)         # static one-hot
            c = A[:, :, k:k + 1] - e_k                        # (bb, D, 1)
            A = A - c * norm_row
            rhs = rhs - c * norm_rhs
        alpha = rhs                                           # (bb, D, 1)
    else:
        # Dynamic-k fallback for large D (masked sublane/lane reductions).
        def gj_step(k, carry):
            A_c, rhs_c = carry
            r_mask = row_iota == k
            c_mask = col_iota == k
            row_k = jnp.sum(jnp.where(r_mask, A_c, 0.0), axis=1, keepdims=True)
            rhs_k = jnp.sum(jnp.where(r_mask, rhs_c, 0.0), axis=1, keepdims=True)
            pivot = jnp.sum(jnp.where(c_mask, row_k, 0.0), axis=2, keepdims=True)
            inv_p = 1.0 / pivot
            norm_row = row_k * inv_p
            norm_rhs = rhs_k * inv_p
            col_k = jnp.sum(jnp.where(c_mask, A_c, 0.0), axis=2, keepdims=True)
            c = col_k - r_mask.astype(jnp.float32)
            return A_c - c * norm_row, rhs_c - c * norm_rhs

        _, alpha = lax.fori_loop(0, D, gj_step, (A, rhs), unroll=8)

    # ---- xi = alpha^T @ x (contraction over D) on the VPU.  Re-read x at
    # the use site so the f32 block is not kept live across the solve. ----
    xi = jnp.sum(alpha * x_ref[...].astype(jnp.float32),
                 axis=1, keepdims=True)                       # (bb, 1, N)
    o_ref[...] = xi.astype(o_ref.dtype)


# --------------------------------------------------------------------------
# Block / VMEM planning
# --------------------------------------------------------------------------
def _round_up(v, m):
    return ((v + m - 1) // m) * m


def _plan_blocks(B, D, N, gram_itemsize):
    """Pick the per-grid-step sub-batch `bb` and a VMEM limit from a budget."""
    lanes = _round_up(max(N, 1), 128)    # lane padding of the x / out tiles
    subl = _round_up(max(D, 1), 8)       # sublane padding
    d_lanes = _round_up(max(D, 1), 128)  # lane padding of K / A tiles

    def footprint(bb):
        x_tile = bb * subl * lanes * 4                     # f32 x block
        out_tile = bb * 1 * lanes * 4                      # (bb, 1, N) f32 out block
        gram_cpy = bb * subl * lanes * gram_itemsize       # copy streamed to MXU
        solve = 4 * bb * subl * d_lanes * 4                # K, A, rank-1 temporaries
        # x / out blocks are double-buffered by the BlockSpec pipeline.
        return 2 * (x_tile + out_tile) + gram_cpy + solve

    # ~40 MiB keeps headroom under v7x's 64 MiB physical VMEM.
    budget = 40 * 1024 * 1024

    # Small D benefits from big sub-batches (amortize ~0.35us/step, interleave
    # independent GJ solves); large D keeps bb small so A/rhs avoid spills.
    if D <= 32:
        cap = 64
    elif D <= 64:
        cap = 8
    elif D <= 128:
        cap = 4
    else:
        cap = 1
    if B >= 2:
        cap = min(cap, max(1, B // 2))   # >= 2 grid steps: both v7x TCs get work
    cap = max(cap, 1)

    bb = 1
    for cand in (1, 2, 4, 8, 16, 32, 64):
        if cand > cap or cand > B:
            break
        if footprint(cand) <= budget:
            bb = cand

    vmem_limit = int(min(96 * 1024 * 1024,
                         max(int(1.5 * footprint(bb)), 16 * 1024 * 1024)))
    return bb, vmem_limit


# --------------------------------------------------------------------------
# Wrapper
# --------------------------------------------------------------------------
def gmp_forward(x, lamb, *, gram_dtype=jnp.float32):
    """x: (B, D, N), lamb: scalar parameter -> (B, N) float32."""
    B, D, N = x.shape
    bb, vmem_limit = _plan_blocks(B, D, N, jnp.dtype(gram_dtype).itemsize)
    grid_b = pl.cdiv(B, bb)

    lamb_arr = jnp.asarray(lamb, jnp.float32).reshape(1)

    kernel = partial(_gmp_kernel,
                     gram_dtype=jnp.dtype(gram_dtype),
                     unrolled_solve=(D <= 64))

    out = pl.pallas_call(
        kernel,
        # Output is (B, 1, N): trailing block dims equal the array dims, so any
        # sub-batch size bb is layout-legal and no wrapper-side padding of N
        # (and its extra HBM pass over x) is needed.
        out_shape=jax.ShapeDtypeStruct((B, 1, N), jnp.float32),
        grid_spec=pltpu.PrefetchScalarGridSpec(
            num_scalar_prefetch=0,
            grid=(grid_b,),
            in_specs=[
                pl.BlockSpec(memory_space=pltpu.MemorySpace.SMEM),  # lamb scalar
                pl.BlockSpec((bb, D, N), lambda b: (b, 0, 0)),      # x sub-batch
            ],
            out_specs=pl.BlockSpec((bb, 1, N), lambda b: (b, 0, 0)),
        ),
        compiler_params=pltpu.CompilerParams(
            dimension_semantics=("parallel",),
            vmem_limit_bytes=vmem_limit,
        ),
    )(lamb_arr, x)

    return out.reshape(B, N)


# --------------------------------------------------------------------------
# Pure-JAX reference
# --------------------------------------------------------------------------
def gmp_reference(x, lamb):
    B, D, N = x.shape
    K = jnp.einsum("bdn,ben->bde", x, x)
    A = K + lamb * jnp.eye(D, dtype=x.dtype)[None]
    o = jnp.ones((B, D, 1), x.dtype)
    alphas = jnp.linalg.solve(A, o)                  # (B, D, 1)
    xi = jnp.einsum("bdo,bdn->bn", alphas, x)        # (B, N)
    return xi


if __name__ == "__main__":
    key = jax.random.PRNGKey(0)
    B, D, N = 2, 16, 64
    x = jax.random.normal(key, (B, D, N), dtype=jnp.float32)

    lamb_init = 1.0  # nn.Parameter(lamb * ones(1)) deterministic init

    ref = gmp_reference(x, lamb_init)

    # Default (f32 Gram) path: matches the f32 reference tightly.
    out = jax.block_until_ready(gmp_forward(x, lamb_init))
    assert out.shape == (B, N)
    assert jnp.allclose(out, ref, rtol=1e-3, atol=1e-3), (
        f"f32 path max abs err {jnp.max(jnp.abs(out - ref))}")

    # bf16-streamed Gram (MXU fast path, f32 accumulation): looser tolerance.
    out_bf16 = jax.block_until_ready(
        gmp_forward(x, lamb_init, gram_dtype=jnp.bfloat16))
    assert jnp.allclose(out_bf16, ref, rtol=3e-2, atol=3e-2), (
        f"bf16 path max abs err {jnp.max(jnp.abs(out_bf16 - ref))}")

    print("KERNEL_OK")
</pallas_src>

<mosaic_0001>
module attributes {stable_mosaic.version = 11 : i64} {
  func.func @_gmp_kernel(%arg0: i32, %arg1: memref<1xf32, #tpu.memory_space<smem>>, %arg2: memref<1x16x64xf32, #tpu.memory_space<vmem>>, %arg3: memref<1x1x64xf32, #tpu.memory_space<vmem>>) attributes {dimension_semantics = [#tpu.dimension_semantics<parallel>], iteration_bounds = array<i64: 2>, scalar_prefetch = 0 : i64, scratch_operands = 0 : i64, tpu.core_type = #tpu.core_type<tc>, window_params = [{transform_indices = @transform_0, window_bounds = array<i64: 1>}, {transform_indices = @transform_1, window_bounds = array<i64: 1, 16, 64>}, {transform_indices = @transform_2, window_bounds = array<i64: 1, 1, 64>}]} {
    %c0 = arith.constant 0 : index
    %0 = memref.load %arg1[%c0] : memref<1xf32, #tpu.memory_space<smem>>
    %c0_0 = arith.constant 0 : index
    %c0_1 = arith.constant 0 : index
    %c0_2 = arith.constant 0 : index
    %1 = vector.load %arg2[%c0_0, %c0_1, %c0_2] : memref<1x16x64xf32, #tpu.memory_space<vmem>>, vector<1x16x64xf32>
    "tpu.trace_start"() <{level = 10 : i32, message = "bdn,ben->bde"}> : () -> ()
    %cst = arith.constant dense<0.000000e+00> : vector<1x16x16xf32>
    %2 = tpu.matmul %1, %1, %cst {dimension_numbers = #tpu.dot_dimension_numbers<[2], [2], [1], [1], [0, 0, 0, 1, 1, 1], [0], [0]>} : vector<1x16x64xf32>, vector<1x16x64xf32>, vector<1x16x16xf32> -> vector<1x16x16xf32>
    "tpu.trace_stop"() : () -> ()
    %3 = tpu.iota {dimensions = array<i32: 1>} : vector<1x16x1xi32>
    %4 = tpu.iota {dimensions = array<i32: 2>} : vector<1x1x16xi32>
    %5 = vector.broadcast %3 : vector<1x16x1xi32> to vector<1x16x16xi32>
    %6 = vector.broadcast %4 : vector<1x1x16xi32> to vector<1x16x16xi32>
    %7 = arith.cmpi eq, %5, %6 : vector<1x16x16xi32>
    %8 = arith.extui %7 : vector<1x16x16xi1> to vector<1x16x16xi32>
    %9 = arith.sitofp %8 : vector<1x16x16xi32> to vector<1x16x16xf32>
    %10 = vector.broadcast %0 : f32 to vector<1x16x16xf32>
    %11 = arith.mulf %10, %9 : vector<1x16x16xf32>
    %12 = arith.addf %2, %11 : vector<1x16x16xf32>
    %cst_3 = arith.constant 1.000000e+00 : f32
    %13 = vector.broadcast %cst_3 : f32 to vector<1x16x1xf32>
    %14 = vector.extract_strided_slice %12 {offsets = [0, 0, 0], sizes = [1, 1, 16], strides = [1, 1, 1]} : vector<1x16x16xf32> to vector<1x1x16xf32>
    %15 = vector.extract_strided_slice %13 {offsets = [0, 0, 0], sizes = [1, 1, 1], strides = [1, 1, 1]} : vector<1x16x1xf32> to vector<1x1x1xf32>
    %16 = vector.extract_strided_slice %14 {offsets = [0, 0, 0], sizes = [1, 1, 1], strides = [1, 1, 1]} : vector<1x1x16xf32> to vector<1x1x1xf32>
    %cst_4 = arith.constant 1.000000e+00 : f32
    %17 = vector.broadcast %cst_4 : f32 to vector<1x1x1xf32>
    %18 = arith.divf %17, %16 : vector<1x1x1xf32>
    %19 = vector.broadcast %18 : vector<1x1x1xf32> to vector<1x1x16xf32>
    %20 = arith.mulf %14, %19 : vector<1x1x16xf32>
    %21 = arith.mulf %15, %18 : vector<1x1x1xf32>
    %c0_i32 = arith.constant 0 : i32
    %22 = vector.broadcast %c0_i32 : i32 to vector<1x16x1xi32>
    %23 = arith.cmpi eq, %3, %22 : vector<1x16x1xi32>
    %24 = arith.extui %23 : vector<1x16x1xi1> to vector<1x16x1xi32>
    %25 = arith.sitofp %24 : vector<1x16x1xi32> to vector<1x16x1xf32>
    %26 = vector.extract_strided_slice %12 {offsets = [0, 0, 0], sizes = [1, 16, 1], strides = [1, 1, 1]} : vector<1x16x16xf32> to vector<1x16x1xf32>
    %27 = arith.subf %26, %25 : vector<1x16x1xf32>
    %28 = vector.broadcast %27 : vector<1x16x1xf32> to vector<1x16x16xf32>
    %29 = vector.broadcast %20 : vector<1x1x16xf32> to vector<1x16x16xf32>
    %30 = arith.mulf %28, %29 : vector<1x16x16xf32>
    %31 = arith.subf %12, %30 : vector<1x16x16xf32>
    %32 = vector.broadcast %21 : vector<1x1x1xf32> to vector<1x16x1xf32>
    %33 = arith.mulf %27, %32 : vector<1x16x1xf32>
    %34 = arith.subf %13, %33 : vector<1x16x1xf32>
    %35 = vector.extract_strided_slice %31 {offsets = [0, 1, 0], sizes = [1, 1, 16], strides = [1, 1, 1]} : vector<1x16x16xf32> to vector<1x1x16xf32>
    %36 = vector.extract_strided_slice %34 {offsets = [0, 1, 0], sizes = [1, 1, 1], strides = [1, 1, 1]} : vector<1x16x1xf32> to vector<1x1x1xf32>
    %37 = vector.extract_strided_slice %35 {offsets = [0, 0, 1], sizes = [1, 1, 1], strides = [1, 1, 1]} : vector<1x1x16xf32> to vector<1x1x1xf32>
    %cst_5 = arith.constant 1.000000e+00 : f32
    %38 = vector.broadcast %cst_5 : f32 to vector<1x1x1xf32>
    %39 = arith.divf %38, %37 : vector<1x1x1xf32>
    %40 = vector.broadcast %39 : vector<1x1x1xf32> to vector<1x1x16xf32>
    %41 = arith.mulf %35, %40 : vector<1x1x16xf32>
    %42 = arith.mulf %36, %39 : vector<1x1x1xf32>
    %c1_i32 = arith.constant 1 : i32
    %43 = vector.broadcast %c1_i32 : i32 to vector<1x16x1xi32>
    %44 = arith.cmpi eq, %3, %43 : vector<1x16x1xi32>
    %45 = arith.extui %44 : vector<1x16x1xi1> to vector<1x16x1xi32>
    %46 = arith.sitofp %45 : vector<1x16x1xi32> to vector<1x16x1xf32>
    %47 = vector.extract_strided_slice %31 {offsets = [0, 0, 1], sizes = [1, 16, 1], strides = [1, 1, 1]} : vector<1x16x16xf32> to vector<1x16x1xf32>
    %48 = arith.subf %47, %46 : vector<1x16x1xf32>
    %49 = vector.broadcast %48 : vector<1x16x1xf32> to vector<1x16x16xf32>
    %50 = vector.broadcast %41 : vector<1x1x16xf32> to vector<1x16x16xf32>
    %51 = arith.mulf %49, %50 : vector<1x16x16xf32>
    %52 = arith.subf %31, %51 : vector<1x16x16xf32>
    %53 = vector.broadcast %42 : vector<1x1x1xf32> to vector<1x16x1xf32>
    %54 = arith.mulf %48, %53 : vector<1x16x1xf32>
    %55 = arith.subf %34, %54 : vector<1x16x1xf32>
    %56 = vector.extract_strided_slice %52 {offsets = [0, 2, 0], sizes = [1, 1, 16], strides = [1, 1, 1]} : vector<1x16x16xf32> to vector<1x1x16xf32>
    %57 = vector.extract_strided_slice %55 {offsets = [0, 2, 0], sizes = [1, 1, 1], strides = [1, 1, 1]} : vector<1x16x1xf32> to vector<1x1x1xf32>
    %58 = vector.extract_strided_slice %56 {offsets = [0, 0, 2], sizes = [1, 1, 1], strides = [1, 1, 1]} : vector<1x1x16xf32> to vector<1x1x1xf32>
    %cst_6 = arith.constant 1.000000e+00 : f32
    %59 = vector.broadcast %cst_6 : f32 to vector<1x1x1xf32>
    %60 = arith.divf %59, %58 : vector<1x1x1xf32>
    %61 = vector.broadcast %60 : vector<1x1x1xf32> to vector<1x1x16xf32>
    %62 = arith.mulf %56, %61 : vector<1x1x16xf32>
    %63 = arith.mulf %57, %60 : vector<1x1x1xf32>
    %c2_i32 = arith.constant 2 : i32
    %64 = vector.broadcast %c2_i32 : i32 to vector<1x16x1xi32>
    %65 = arith.cmpi eq, %3, %64 : vector<1x16x1xi32>
    %66 = arith.extui %65 : vector<1x16x1xi1> to vector<1x16x1xi32>
    %67 = arith.sitofp %66 : vector<1x16x1xi32> to vector<1x16x1xf32>
    %68 = vector.extract_strided_slice %52 {offsets = [0, 0, 2], sizes = [1, 16, 1], strides = [1, 1, 1]} : vector<1x16x16xf32> to vector<1x16x1xf32>
    %69 = arith.subf %68, %67 : vector<1x16x1xf32>
    %70 = vector.broadcast %69 : vector<1x16x1xf32> to vector<1x16x16xf32>
    %71 = vector.broadcast %62 : vector<1x1x16xf32> to vector<1x16x16xf32>
    %72 = arith.mulf %70, %71 : vector<1x16x16xf32>
    %73 = arith.subf %52, %72 : vector<1x16x16xf32>
    %74 = vector.broadcast %63 : vector<1x1x1xf32> to vector<1x16x1xf32>
    %75 = arith.mulf %69, %74 : vector<1x16x1xf32>
    %76 = arith.subf %55, %75 : vector<1x16x1xf32>
    %77 = vector.extract_strided_slice %73 {offsets = [0, 3, 0], sizes = [1, 1, 16], strides = [1, 1, 1]} : vector<1x16x16xf32> to vector<1x1x16xf32>
    %78 = vector.extract_strided_slice %76 {offsets = [0, 3, 0], sizes = [1, 1, 1], strides = [1, 1, 1]} : vector<1x16x1xf32> to vector<1x1x1xf32>
    %79 = vector.extract_strided_slice %77 {offsets = [0, 0, 3], sizes = [1, 1, 1], strides = [1, 1, 1]} : vector<1x1x16xf32> to vector<1x1x1xf32>
    %cst_7 = arith.constant 1.000000e+00 : f32
    %80 = vector.broadcast %cst_7 : f32 to vector<1x1x1xf32>
    %81 = arith.divf %80, %79 : vector<1x1x1xf32>
    %82 = vector.broadcast %81 : vector<1x1x1xf32> to vector<1x1x16xf32>
    %83 = arith.mulf %77, %82 : vector<1x1x16xf32>
    %84 = arith.mulf %78, %81 : vector<1x1x1xf32>
    %c3_i32 = arith.constant 3 : i32
    %85 = vector.broadcast %c3_i32 : i32 to vector<1x16x1xi32>
    %86 = arith.cmpi eq, %3, %85 : vector<1x16x1xi32>
    %87 = arith.extui %86 : vector<1x16x1xi1> to vector<1x16x1xi32>
    %88 = arith.sitofp %87 : vector<1x16x1xi32> to vector<1x16x1xf32>
    %89 = vector.extract_strided_slice %73 {offsets = [0, 0, 3], sizes = [1, 16, 1], strides = [1, 1, 1]} : vector<1x16x16xf32> to vector<1x16x1xf32>
    %90 = arith.subf %89, %88 : vector<1x16x1xf32>
    %91 = vector.broadcast %90 : vector<1x16x1xf32> to vector<1x16x16xf32>
    %92 = vector.broadcast %83 : vector<1x1x16xf32> to vector<1x16x16xf32>
    %93 = arith.mulf %91, %92 : vector<1x16x16xf32>
    %94 = arith.subf %73, %93 : vector<1x16x16xf32>
    %95 = vector.broadcast %84 : vector<1x1x1xf32> to vector<1x16x1xf32>
    %96 = arith.mulf %90, %95 : vector<1x16x1xf32>
    %97 = arith.subf %76, %96 : vector<1x16x1xf32>
    %98 = vector.extract_strided_slice %94 {offsets = [0, 4, 0], sizes = [1, 1, 16], strides = [1, 1, 1]} : vector<1x16x16xf32> to vector<1x1x16xf32>
    %99 = vector.extract_strided_slice %97 {offsets = [0, 4, 0], sizes = [1, 1, 1], strides = [1, 1, 1]} : vector<1x16x1xf32> to vector<1x1x1xf32>
    %100 = vector.extract_strided_slice %98 {offsets = [0, 0, 4], sizes = [1, 1, 1], strides = [1, 1, 1]} : vector<1x1x16xf32> to vector<1x1x1xf32>
    %cst_8 = arith.constant 1.000000e+00 : f32
    %101 = vector.broadcast %cst_8 : f32 to vector<1x1x1xf32>
    %102 = arith.divf %101, %100 : vector<1x1x1xf32>
    %103 = vector.broadcast %102 : vector<1x1x1xf32> to vector<1x1x16xf32>
    %104 = arith.mulf %98, %103 : vector<1x1x16xf32>
    %105 = arith.mulf %99, %102 : vector<1x1x1xf32>
    %c4_i32 = arith.constant 4 : i32
    %106 = vector.broadcast %c4_i32 : i32 to vector<1x16x1xi32>
    %107 = arith.cmpi eq, %3, %106 : vector<1x16x1xi32>
    %108 = arith.extui %107 : vector<1x16x1xi1> to vector<1x16x1xi32>
    %109 = arith.sitofp %108 : vector<1x16x1xi32> to vector<1x16x1xf32>
    %110 = vector.extract_strided_slice %94 {offsets = [0, 0, 4], sizes = [1, 16, 1], strides = [1, 1, 1]} : vector<1x16x16xf32> to vector<1x16x1xf32>
    %111 = arith.subf %110, %109 : vector<1x16x1xf32>
    %112 = vector.broadcast %111 : vector<1x16x1xf32> to vector<1x16x16xf32>
    %113 = vector.broadcast %104 : vector<1x1x16xf32> to vector<1x16x16xf32>
    %114 = arith.mulf %112, %113 : vector<1x16x16xf32>
    %115 = arith.subf %94, %114 : vector<1x16x16xf32>
    %116 = vector.broadcast %105 : vector<1x1x1xf32> to vector<1x16x1xf32>
    %117 = arith.mulf %111, %116 : vector<1x16x1xf32>
    %118 = arith.subf %97, %117 : vector<1x16x1xf32>
    %119 = vector.extract_strided_slice %115 {offsets = [0, 5, 0], sizes = [1, 1, 16], strides = [1, 1, 1]} : vector<1x16x16xf32> to vector<1x1x16xf32>
    %120 = vector.extract_strided_slice %118 {offsets = [0, 5, 0], sizes = [1, 1, 1], strides = [1, 1, 1]} : vector<1x16x1xf32> to vector<1x1x1xf32>
    %121 = vector.extract_strided_slice %119 {offsets = [0, 0, 5], sizes = [1, 1, 1], strides = [1, 1, 1]} : vector<1x1x16xf32> to vector<1x1x1xf32>
    %cst_9 = arith.constant 1.000000e+00 : f32
    %122 = vector.broadcast %cst_9 : f32 to vector<1x1x1xf32>
    %123 = arith.divf %122, %121 : vector<1x1x1xf32>
    %124 = vector.broadcast %123 : vector<1x1x1xf32> to vector<1x1x16xf32>
    %125 = arith.mulf %119, %124 : vector<1x1x16xf32>
    %126 = arith.mulf %120, %123 : vector<1x1x1xf32>
    %c5_i32 = arith.constant 5 : i32
    %127 = vector.broadcast %c5_i32 : i32 to vector<1x16x1xi32>
    %128 = arith.cmpi eq, %3, %127 : vector<1x16x1xi32>
    %129 = arith.extui %128 : vector<1x16x1xi1> to vector<1x16x1xi32>
    %130 = arith.sitofp %129 : vector<1x16x1xi32> to vector<1x16x1xf32>
    %131 = vector.extract_strided_slice %115 {offsets = [0, 0, 5], sizes = [1, 16, 1], strides = [1, 1, 1]} : vector<1x16x16xf32> to vector<1x16x1xf32>
    %132 = arith.subf %131, %130 : vector<1x16x1xf32>
    %133 = vector.broadcast %132 : vector<1x16x1xf32> to vector<1x16x16xf32>
    %134 = vector.broadcast %125 : vector<1x1x16xf32> to vector<1x16x16xf32>
    %135 = arith.mulf %133, %134 : vector<1x16x16xf32>
    %136 = arith.subf %115, %135 : vector<1x16x16xf32>
    %137 = vector.broadcast %126 : vector<1x1x1xf32> to vector<1x16x1xf32>
    %138 = arith.mulf %132, %137 : vector<1x16x1xf32>
    %139 = arith.subf %118, %138 : vector<1x16x1xf32>
    %140 = vector.extract_strided_slice %136 {offsets = [0, 6, 0], sizes = [1, 1, 16], strides = [1, 1, 1]} : vector<1x16x16xf32> to vector<1x1x16xf32>
    %141 = vector.extract_strided_slice %139 {offsets = [0, 6, 0], sizes = [1, 1, 1], strides = [1, 1, 1]} : vector<1x16x1xf32> to vector<1x1x1xf32>
    %142 = vector.extract_strided_slice %140 {offsets = [0, 0, 6], sizes = [1, 1, 1], strides = [1, 1, 1]} : vector<1x1x16xf32> to vector<1x1x1xf32>
    %cst_10 = arith.constant 1.000000e+00 : f32
    %143 = vector.broadcast %cst_10 : f32 to vector<1x1x1xf32>
    %144 = arith.divf %143, %142 : vector<1x1x1xf32>
    %145 = vector.broadcast %144 : vector<1x1x1xf32> to vector<1x1x16xf32>
    %146 = arith.mulf %140, %145 : vector<1x1x16xf32>
    %147 = arith.mulf %141, %144 : vector<1x1x1xf32>
    %c6_i32 = arith.constant 6 : i32
    %148 = vector.broadcast %c6_i32 : i32 to vector<1x16x1xi32>
    %149 = arith.cmpi eq, %3, %148 : vector<1x16x1xi32>
    %150 = arith.extui %149 : vector<1x16x1xi1> to vector<1x16x1xi32>
    %151 = arith.sitofp %150 : vector<1x16x1xi32> to vector<1x16x1xf32>
    %152 = vector.extract_strided_slice %136 {offsets = [0, 0, 6], sizes = [1, 16, 1], strides = [1, 1, 1]} : vector<1x16x16xf32> to vector<1x16x1xf32>
    %153 = arith.subf %152, %151 : vector<1x16x1xf32>
    %154 = vector.broadcast %153 : vector<1x16x1xf32> to vector<1x16x16xf32>
    %155 = vector.broadcast %146 : vector<1x1x16xf32> to vector<1x16x16xf32>
    %156 = arith.mulf %154, %155 : vector<1x16x16xf32>
    %157 = arith.subf %136, %156 : vector<1x16x16xf32>
    %158 = vector.broadcast %147 : vector<1x1x1xf32> to vector<1x16x1xf32>
    %159 = arith.mulf %153, %158 : vector<1x16x1xf32>
    %160 = arith.subf %139, %159 : vector<1x16x1xf32>
    %161 = vector.extract_strided_slice %157 {offsets = [0, 7, 0], sizes = [1, 1, 16], strides = [1, 1, 1]} : vector<1x16x16xf32> to vector<1x1x16xf32>
    %162 = vector.extract_strided_slice %160 {offsets = [0, 7, 0], sizes = [1, 1, 1], strides = [1, 1, 1]} : vector<1x16x1xf32> to vector<1x1x1xf32>
    %163 = vector.extract_strided_slice %161 {offsets = [0, 0, 7], sizes = [1, 1, 1], strides = [1, 1, 1]} : vector<1x1x16xf32> to vector<1x1x1xf32>
    %cst_11 = arith.constant 1.000000e+00 : f32
    %164 = vector.broadcast %cst_11 : f32 to vector<1x1x1xf32>
    %165 = arith.divf %164, %163 : vector<1x1x1xf32>
    %166 = vector.broadcast %165 : vector<1x1x1xf32> to vector<1x1x16xf32>
    %167 = arith.mulf %161, %166 : vector<1x1x16xf32>
    %168 = arith.mulf %162, %165 : vector<1x1x1xf32>
    %c7_i32 = arith.constant 7 : i32
    %169 = vector.broadcast %c7_i32 : i32 to vector<1x16x1xi32>
    %170 = arith.cmpi eq, %3, %169 : vector<1x16x1xi32>
    %171 = arith.extui %170 : vector<1x16x1xi1> to vector<1x16x1xi32>
    %172 = arith.sitofp %171 : vector<1x16x1xi32> to vector<1x16x1xf32>
    %173 = vector.extract_strided_slice %157 {offsets = [0, 0, 7], sizes = [1, 16, 1], strides = [1, 1, 1]} : vector<1x16x16xf32> to vector<1x16x1xf32>
    %174 = arith.subf %173, %172 : vector<1x16x1xf32>
    %175 = vector.broadcast %174 : vector<1x16x1xf32> to vector<1x16x16xf32>
    %176 = vector.broadcast %167 : vector<1x1x16xf32> to vector<1x16x16xf32>
    %177 = arith.mulf %175, %176 : vector<1x16x16xf32>
    %178 = arith.subf %157, %177 : vector<1x16x16xf32>
    %179 = vector.broadcast %168 : vector<1x1x1xf32> to vector<1x16x1xf32>
    %180 = arith.mulf %174, %179 : vector<1x16x1xf32>
    %181 = arith.subf %160, %180 : vector<1x16x1xf32>
    %182 = vector.extract_strided_slice %178 {offsets = [0, 8, 0], sizes = [1, 1, 16], strides = [1, 1, 1]} : vector<1x16x16xf32> to vector<1x1x16xf32>
    %183 = vector.extract_strided_slice %181 {offsets = [0, 8, 0], sizes = [1, 1, 1], strides = [1, 1, 1]} : vector<1x16x1xf32> to vector<1x1x1xf32>
    %184 = vector.extract_strided_slice %182 {offsets = [0, 0, 8], sizes = [1, 1, 1], strides = [1, 1, 1]} : vector<1x1x16xf32> to vector<1x1x1xf32>
    %cst_12 = arith.constant 1.000000e+00 : f32
    %185 = vector.broadcast %cst_12 : f32 to vector<1x1x1xf32>
    %186 = arith.divf %185, %184 : vector<1x1x1xf32>
    %187 = vector.broadcast %186 : vector<1x1x1xf32> to vector<1x1x16xf32>
    %188 = arith.mulf %182, %187 : vector<1x1x16xf32>
    %189 = arith.mulf %183, %186 : vector<1x1x1xf32>
    %c8_i32 = arith.constant 8 : i32
    %190 = vector.broadcast %c8_i32 : i32 to vector<1x16x1xi32>
    %191 = arith.cmpi eq, %3, %190 : vector<1x16x1xi32>
    %192 = arith.extui %191 : vector<1x16x1xi1> to vector<1x16x1xi32>
    %193 = arith.sitofp %192 : vector<1x16x1xi32> to vector<1x16x1xf32>
    %194 = vector.extract_strided_slice %178 {offsets = [0, 0, 8], sizes = [1, 16, 1], strides = [1, 1, 1]} : vector<1x16x16xf32> to vector<1x16x1xf32>
    %195 = arith.subf %194, %193 : vector<1x16x1xf32>
    %196 = vector.broadcast %195 : vector<1x16x1xf32> to vector<1x16x16xf32>
    %197 = vector.broadcast %188 : vector<1x1x16xf32> to vector<1x16x16xf32>
    %198 = arith.mulf %196, %197 : vector<1x16x16xf32>
    %199 = arith.subf %178, %198 : vector<1x16x16xf32>
    %200 = vector.broadcast %189 : vector<1x1x1xf32> to vector<1x16x1xf32>
    %201 = arith.mulf %195, %200 : vector<1x16x1xf32>
    %202 = arith.subf %181, %201 : vector<1x16x1xf32>
    %203 = vector.extract_strided_slice %199 {offsets = [0, 9, 0], sizes = [1, 1, 16], strides = [1, 1, 1]} : vector<1x16x16xf32> to vector<1x1x16xf32>
    %204 = vector.extract_strided_slice %202 {offsets = [0, 9, 0], sizes = [1, 1, 1], strides = [1, 1, 1]} : vector<1x16x1xf32> to vector<1x1x1xf32>
    %205 = vector.extract_strided_slice %203 {offsets = [0, 0, 9], sizes = [1, 1, 1], strides = [1, 1, 1]} : vector<1x1x16xf32> to vector<1x1x1xf32>
    %cst_13 = arith.constant 1.000000e+00 : f32
    %206 = vector.broadcast %cst_13 : f32 to vector<1x1x1xf32>
    %207 = arith.divf %206, %205 : vector<1x1x1xf32>
    %208 = vector.broadcast %207 : vector<1x1x1xf32> to vector<1x1x16xf32>
    %209 = arith.mulf %203, %208 : vector<1x1x16xf32>
    %210 = arith.mulf %204, %207 : vector<1x1x1xf32>
    %c9_i32 = arith.constant 9 : i32
    %211 = vector.broadcast %c9_i32 : i32 to vector<1x16x1xi32>
    %212 = arith.cmpi eq, %3, %211 : vector<1x16x1xi32>
    %213 = arith.extui %212 : vector<1x16x1xi1> to vector<1x16x1xi32>
    %214 = arith.sitofp %213 : vector<1x16x1xi32> to vector<1x16x1xf32>
    %215 = vector.extract_strided_slice %199 {offsets = [0, 0, 9], sizes = [1, 16, 1], strides = [1, 1, 1]} : vector<1x16x16xf32> to vector<1x16x1xf32>
    %216 = arith.subf %215, %214 : vector<1x16x1xf32>
    %217 = vector.broadcast %216 : vector<1x16x1xf32> to vector<1x16x16xf32>
    %218 = vector.broadcast %209 : vector<1x1x16xf32> to vector<1x16x16xf32>
    %219 = arith.mulf %217, %218 : vector<1x16x16xf32>
    %220 = arith.subf %199, %219 : vector<1x16x16xf32>
    %221 = vector.broadcast %210 : vector<1x1x1xf32> to vector<1x16x1xf32>
    %222 = arith.mulf %216, %221 : vector<1x16x1xf32>
    %223 = arith.subf %202, %222 : vector<1x16x1xf32>
    %224 = vector.extract_strided_slice %220 {offsets = [0, 10, 0], sizes = [1, 1, 16], strides = [1, 1, 1]} : vector<1x16x16xf32> to vector<1x1x16xf32>
    %225 = vector.extract_strided_slice %223 {offsets = [0, 10, 0], sizes = [1, 1, 1], strides = [1, 1, 1]} : vector<1x16x1xf32> to vector<1x1x1xf32>
    %226 = vector.extract_strided_slice %224 {offsets = [0, 0, 10], sizes = [1, 1, 1], strides = [1, 1, 1]} : vector<1x1x16xf32> to vector<1x1x1xf32>
    %cst_14 = arith.constant 1.000000e+00 : f32
    %227 = vector.broadcast %cst_14 : f32 to vector<1x1x1xf32>
    %228 = arith.divf %227, %226 : vector<1x1x1xf32>
    %229 = vector.broadcast %228 : vector<1x1x1xf32> to vector<1x1x16xf32>
    %230 = arith.mulf %224, %229 : vector<1x1x16xf32>
    %231 = arith.mulf %225, %228 : vector<1x1x1xf32>
    %c10_i32 = arith.constant 10 : i32
    %232 = vector.broadcast %c10_i32 : i32 to vector<1x16x1xi32>
    %233 = arith.cmpi eq, %3, %232 : vector<1x16x1xi32>
    %234 = arith.extui %233 : vector<1x16x1xi1> to vector<1x16x1xi32>
    %235 = arith.sitofp %234 : vector<1x16x1xi32> to vector<1x16x1xf32>
    %236 = vector.extract_strided_slice %220 {offsets = [0, 0, 10], sizes = [1, 16, 1], strides = [1, 1, 1]} : vector<1x16x16xf32> to vector<1x16x1xf32>
    %237 = arith.subf %236, %235 : vector<1x16x1xf32>
    %238 = vector.broadcast %237 : vector<1x16x1xf32> to vector<1x16x16xf32>
    %239 = vector.broadcast %230 : vector<1x1x16xf32> to vector<1x16x16xf32>
    %240 = arith.mulf %238, %239 : vector<1x16x16xf32>
    %241 = arith.subf %220, %240 : vector<1x16x16xf32>
    %242 = vector.broadcast %231 : vector<1x1x1xf32> to vector<1x16x1xf32>
    %243 = arith.mulf %237, %242 : vector<1x16x1xf32>
    %244 = arith.subf %223, %243 : vector<1x16x1xf32>
    %245 = vector.extract_strided_slice %241 {offsets = [0, 11, 0], sizes = [1, 1, 16], strides = [1, 1, 1]} : vector<1x16x16xf32> to vector<1x1x16xf32>
    %246 = vector.extract_strided_slice %244 {offsets = [0, 11, 0], sizes = [1, 1, 1], strides = [1, 1, 1]} : vector<1x16x1xf32> to vector<1x1x1xf32>
    %247 = vector.extract_strided_slice %245 {offsets = [0, 0, 11], sizes = [1, 1, 1], strides = [1, 1, 1]} : vector<1x1x16xf32> to vector<1x1x1xf32>
    %cst_15 = arith.constant 1.000000e+00 : f32
    %248 = vector.broadcast %cst_15 : f32 to vector<1x1x1xf32>
    %249 = arith.divf %248, %247 : vector<1x1x1xf32>
    %250 = vector.broadcast %249 : vector<1x1x1xf32> to vector<1x1x16xf32>
    %251 = arith.mulf %245, %250 : vector<1x1x16xf32>
    %252 = arith.mulf %246, %249 : vector<1x1x1xf32>
    %c11_i32 = arith.constant 11 : i32
    %253 = vector.broadcast %c11_i32 : i32 to vector<1x16x1xi32>
    %254 = arith.cmpi eq, %3, %253 : vector<1x16x1xi32>
    %255 = arith.extui %254 : vector<1x16x1xi1> to vector<1x16x1xi32>
    %256 = arith.sitofp %255 : vector<1x16x1xi32> to vector<1x16x1xf32>
    %257 = vector.extract_strided_slice %241 {offsets = [0, 0, 11], sizes = [1, 16, 1], strides = [1, 1, 1]} : vector<1x16x16xf32> to vector<1x16x1xf32>
    %258 = arith.subf %257, %256 : vector<1x16x1xf32>
    %259 = vector.broadcast %258 : vector<1x16x1xf32> to vector<1x16x16xf32>
    %260 = vector.broadcast %251 : vector<1x1x16xf32> to vector<1x16x16xf32>
    %261 = arith.mulf %259, %260 : vector<1x16x16xf32>
    %262 = arith.subf %241, %261 : vector<1x16x16xf32>
    %263 = vector.broadcast %252 : vector<1x1x1xf32> to vector<1x16x1xf32>
    %264 = arith.mulf %258, %263 : vector<1x16x1xf32>
    %265 = arith.subf %244, %264 : vector<1x16x1xf32>
    %266 = vector.extract_strided_slice %262 {offsets = [0, 12, 0], sizes = [1, 1, 16], strides = [1, 1, 1]} : vector<1x16x16xf32> to vector<1x1x16xf32>
    %267 = vector.extract_strided_slice %265 {offsets = [0, 12, 0], sizes = [1, 1, 1], strides = [1, 1, 1]} : vector<1x16x1xf32> to vector<1x1x1xf32>
    %268 = vector.extract_strided_slice %266 {offsets = [0, 0, 12], sizes = [1, 1, 1], strides = [1, 1, 1]} : vector<1x1x16xf32> to vector<1x1x1xf32>
    %cst_16 = arith.constant 1.000000e+00 : f32
    %269 = vector.broadcast %cst_16 : f32 to vector<1x1x1xf32>
    %270 = arith.divf %269, %268 : vector<1x1x1xf32>
    %271 = vector.broadcast %270 : vector<1x1x1xf32> to vector<1x1x16xf32>
    %272 = arith.mulf %266, %271 : vector<1x1x16xf32>
    %273 = arith.mulf %267, %270 : vector<1x1x1xf32>
    %c12_i32 = arith.constant 12 : i32
    %274 = vector.broadcast %c12_i32 : i32 to vector<1x16x1xi32>
    %275 = arith.cmpi eq, %3, %274 : vector<1x16x1xi32>
    %276 = arith.extui %275 : vector<1x16x1xi1> to vector<1x16x1xi32>
    %277 = arith.sitofp %276 : vector<1x16x1xi32> to vector<1x16x1xf32>
    %278 = vector.extract_strided_slice %262 {offsets = [0, 0, 12], sizes = [1, 16, 1], strides = [1, 1, 1]} : vector<1x16x16xf32> to vector<1x16x1xf32>
    %279 = arith.subf %278, %277 : vector<1x16x1xf32>
    %280 = vector.broadcast %279 : vector<1x16x1xf32> to vector<1x16x16xf32>
    %281 = vector.broadcast %272 : vector<1x1x16xf32> to vector<1x16x16xf32>
    %282 = arith.mulf %280, %281 : vector<1x16x16xf32>
    %283 = arith.subf %262, %282 : vector<1x16x16xf32>
    %284 = vector.broadcast %273 : vector<1x1x1xf32> to vector<1x16x1xf32>
    %285 = arith.mulf %279, %284 : vector<1x16x1xf32>
    %286 = arith.subf %265, %285 : vector<1x16x1xf32>
    %287 = vector.extract_strided_slice %283 {offsets = [0, 13, 0], sizes = [1, 1, 16], strides = [1, 1, 1]} : vector<1x16x16xf32> to vector<1x1x16xf32>
    %288 = vector.extract_strided_slice %286 {offsets = [0, 13, 0], sizes = [1, 1, 1], strides = [1, 1, 1]} : vector<1x16x1xf32> to vector<1x1x1xf32>
    %289 = vector.extract_strided_slice %287 {offsets = [0, 0, 13], sizes = [1, 1, 1], strides = [1, 1, 1]} : vector<1x1x16xf32> to vector<1x1x1xf32>
    %cst_17 = arith.constant 1.000000e+00 : f32
    %290 = vector.broadcast %cst_17 : f32 to vector<1x1x1xf32>
    %291 = arith.divf %290, %289 : vector<1x1x1xf32>
    %292 = vector.broadcast %291 : vector<1x1x1xf32> to vector<1x1x16xf32>
    %293 = arith.mulf %287, %292 : vector<1x1x16xf32>
    %294 = arith.mulf %288, %291 : vector<1x1x1xf32>
    %c13_i32 = arith.constant 13 : i32
    %295 = vector.broadcast %c13_i32 : i32 to vector<1x16x1xi32>
    %296 = arith.cmpi eq, %3, %295 : vector<1x16x1xi32>
    %297 = arith.extui %296 : vector<1x16x1xi1> to vector<1x16x1xi32>
    %298 = arith.sitofp %297 : vector<1x16x1xi32> to vector<1x16x1xf32>
    %299 = vector.extract_strided_slice %283 {offsets = [0, 0, 13], sizes = [1, 16, 1], strides = [1, 1, 1]} : vector<1x16x16xf32> to vector<1x16x1xf32>
    %300 = arith.subf %299, %298 : vector<1x16x1xf32>
    %301 = vector.broadcast %300 : vector<1x16x1xf32> to vector<1x16x16xf32>
    %302 = vector.broadcast %293 : vector<1x1x16xf32> to vector<1x16x16xf32>
    %303 = arith.mulf %301, %302 : vector<1x16x16xf32>
    %304 = arith.subf %283, %303 : vector<1x16x16xf32>
    %305 = vector.broadcast %294 : vector<1x1x1xf32> to vector<1x16x1xf32>
    %306 = arith.mulf %300, %305 : vector<1x16x1xf32>
    %307 = arith.subf %286, %306 : vector<1x16x1xf32>
    %308 = vector.extract_strided_slice %304 {offsets = [0, 14, 0], sizes = [1, 1, 16], strides = [1, 1, 1]} : vector<1x16x16xf32> to vector<1x1x16xf32>
    %309 = vector.extract_strided_slice %307 {offsets = [0, 14, 0], sizes = [1, 1, 1], strides = [1, 1, 1]} : vector<1x16x1xf32> to vector<1x1x1xf32>
    %310 = vector.extract_strided_slice %308 {offsets = [0, 0, 14], sizes = [1, 1, 1], strides = [1, 1, 1]} : vector<1x1x16xf32> to vector<1x1x1xf32>
    %cst_18 = arith.constant 1.000000e+00 : f32
    %311 = vector.broadcast %cst_18 : f32 to vector<1x1x1xf32>
    %312 = arith.divf %311, %310 : vector<1x1x1xf32>
    %313 = vector.broadcast %312 : vector<1x1x1xf32> to vector<1x1x16xf32>
    %314 = arith.mulf %308, %313 : vector<1x1x16xf32>
    %315 = arith.mulf %309, %312 : vector<1x1x1xf32>
    %c14_i32 = arith.constant 14 : i32
    %316 = vector.broadcast %c14_i32 : i32 to vector<1x16x1xi32>
    %317 = arith.cmpi eq, %3, %316 : vector<1x16x1xi32>
    %318 = arith.extui %317 : vector<1x16x1xi1> to vector<1x16x1xi32>
    %319 = arith.sitofp %318 : vector<1x16x1xi32> to vector<1x16x1xf32>
    %320 = vector.extract_strided_slice %304 {offsets = [0, 0, 14], sizes = [1, 16, 1], strides = [1, 1, 1]} : vector<1x16x16xf32> to vector<1x16x1xf32>
    %321 = arith.subf %320, %319 : vector<1x16x1xf32>
    %322 = vector.broadcast %321 : vector<1x16x1xf32> to vector<1x16x16xf32>
    %323 = vector.broadcast %314 : vector<1x1x16xf32> to vector<1x16x16xf32>
    %324 = arith.mulf %322, %323 : vector<1x16x16xf32>
    %325 = arith.subf %304, %324 : vector<1x16x16xf32>
    %326 = vector.broadcast %315 : vector<1x1x1xf32> to vector<1x16x1xf32>
    %327 = arith.mulf %321, %326 : vector<1x16x1xf32>
    %328 = arith.subf %307, %327 : vector<1x16x1xf32>
    %329 = vector.extract_strided_slice %325 {offsets = [0, 15, 0], sizes = [1, 1, 16], strides = [1, 1, 1]} : vector<1x16x16xf32> to vector<1x1x16xf32>
    %330 = vector.extract_strided_slice %328 {offsets = [0, 15, 0], sizes = [1, 1, 1], strides = [1, 1, 1]} : vector<1x16x1xf32> to vector<1x1x1xf32>
    %331 = vector.extract_strided_slice %329 {offsets = [0, 0, 15], sizes = [1, 1, 1], strides = [1, 1, 1]} : vector<1x1x16xf32> to vector<1x1x1xf32>
    %cst_19 = arith.constant 1.000000e+00 : f32
    %332 = vector.broadcast %cst_19 : f32 to vector<1x1x1xf32>
    %333 = arith.divf %332, %331 : vector<1x1x1xf32>
    %334 = arith.mulf %330, %333 : vector<1x1x1xf32>
    %c15_i32 = arith.constant 15 : i32
    %335 = vector.broadcast %c15_i32 : i32 to vector<1x16x1xi32>
    %336 = arith.cmpi eq, %3, %335 : vector<1x16x1xi32>
    %337 = arith.extui %336 : vector<1x16x1xi1> to vector<1x16x1xi32>
    %338 = arith.sitofp %337 : vector<1x16x1xi32> to vector<1x16x1xf32>
    %339 = vector.extract_strided_slice %325 {offsets = [0, 0, 15], sizes = [1, 16, 1], strides = [1, 1, 1]} : vector<1x16x16xf32> to vector<1x16x1xf32>
    %340 = arith.subf %339, %338 : vector<1x16x1xf32>
    %341 = vector.broadcast %334 : vector<1x1x1xf32> to vector<1x16x1xf32>
    %342 = arith.mulf %340, %341 : vector<1x16x1xf32>
    %343 = arith.subf %328, %342 : vector<1x16x1xf32>
    %c0_20 = arith.constant 0 : index
    %c0_21 = arith.constant 0 : index
    %c0_22 = arith.constant 0 : index
    %344 = vector.load %arg2[%c0_20, %c0_21, %c0_22] : memref<1x16x64xf32, #tpu.memory_space<vmem>>, vector<1x16x64xf32>
    %345 = vector.broadcast %343 : vector<1x16x1xf32> to vector<1x16x64xf32>
    %346 = arith.mulf %345, %344 : vector<1x16x64xf32>
    %cst_23 = arith.constant dense<0.000000e+00> : vector<1x64xf32>
    %347 = vector.multi_reduction <add>, %346, %cst_23 [1] : vector<1x16x64xf32> to vector<1x64xf32>
    %348 = vector.shape_cast %347 : vector<1x64xf32> to vector<1x1x64xf32>
    %c0_24 = arith.constant 0 : index
    %c0_25 = arith.constant 0 : index
    %c0_26 = arith.constant 0 : index
    %349 = vector.load %arg3[%c0_24, %c0_25, %c0_26] : memref<1x1x64xf32, #tpu.memory_space<vmem>>, vector<1x1x64xf32>
    tpu.vector_store %arg3[%c0_24, %c0_25, %c0_26], %348 {strides = array<i32>} : memref<1x1x64xf32, #tpu.memory_space<vmem>>, vector<1x1x64xf32>,
    return
  }
  func.func @transform_0(%arg0: i32) -> i32 {
    %c0_i32 = arith.constant 0 : i32
    %c0_i32_0 = arith.constant 0 : i32
    return %c0_i32 : i32
  }
  func.func @transform_1(%arg0: i32) -> (i32, i32, i32) {
    %c0_i32 = arith.constant 0 : i32
    %c0_i32_0 = arith.constant 0 : i32
    %c0_i32_1 = arith.constant 0 : i32
    return %arg0, %c0_i32, %c0_i32_0 : i32, i32, i32
  }
  func.func @transform_2(%arg0: i32) -> (i32, i32, i32) {
    %c0_i32 = arith.constant 0 : i32
    %c0_i32_0 = arith.constant 0 : i32
    %c0_i32_1 = arith.constant 0 : i32
    return %arg0, %c0_i32, %c0_i32_0 : i32, i32, i32
  }
}

</mosaic_0001>

<bundles_post_ra>
// kernel: tpu_custom_call.1
= control target key start
LH: loop header
LB: loop body
LE: loop exit
PB: predicated region body
PF: predicated region fallthrough
CT: control target
= control target key end

     0   :  { %s2141_s0 = inlined_call_operand.<no memory space> [shape: f32[1], index: 0, kind: input, shape index: {}]   ;;  %s2142_s1 = inlined_call_operand.hbm [shape: f32[2,16,64], index: 1, kind: input, shape index: {}]   ;;  %s2143_s2 = inlined_call_operand.hbm [shape: f32[2,1,64], index: 2, kind: output, shape index: {}]  }
   0x1   :  { %7 = sst [smem:[#allocation2]] %s2141_s0 }
   0x2   :  { %8 = vsyncpa [#allocation4], 0 }
   0x3   :  { %10 = vsyncpa [#allocation4 + $0x1], 0 }
   0x4   :  { %11 = vsyncpa [#allocation5], 0 }
   0x5   :  { %13 = vsyncpa [#allocation5 + $0x1], 0  ;;  %s1636_s11 = smov 0   ;;  %s1638_s12 = smov 0  }
   0x6   :  { %s1640_s13 = smov 0   ;;  %s1642_s14 = smov 0  }
   0x7 LB: > { %s1657_s0 = sadd.s32 4294967295, %s1566_s14   ;;  %s1254_s15 = sadd.s32 4294967294, %s1566_s14   ;;  %s1566_s14 = sphi %s1642_s14, %s2156_s14   ;;  %s1562_s13 = sphi %s1640_s13, %s2155_s13   ;;  %s1558_s12 = sphi %s1638_s12, %s2154_s12   ;;  %s1554_s11 = sphi %s1636_s11, %s2153_s11  }
   0x8   : > { %s1661_s16 = sadd.s32 1, %s1566_s14   ;;  %s47_s17 = sadd.s32 1, %s1562_s13 }
   0x9   : > { %s44_s18 = ssub.s32 %s1566_s14, %s1661_s16  ;;  %p54_p0 = scmp.ne.s32.totalorder %s1562_s13, %s1558_s12 }
   0xa   : > { %p45_p1 = scmp.eq.s32.totalorder %s44_s18, 0  ;;  %p55_p2 = scmp.eq.s32.totalorder %s1566_s14, 0 }
   0xb   : > { %p60_p3 = scmp.ne.s32.totalorder %s1558_s12, %s1554_s11  ;;  %p61_p4 = scmp.eq.s32.totalorder %s1657_s0, 0 }
   0xc   : > { %s1673_s19 = scalar_select %p45_p1, %s1562_s13, %s47_s17  }
   0xd   : > { %p1675_p5 = por %p55_p2, %p54_p0  ;;  %p1679_p6 = por %p61_p4, %p60_p3 }
   0xe   : > { %p84_p7 = scmp.eq.s32.totalorder %s1657_s0, 1  ;;  %p90_p8 = scmp.eq.s32.totalorder %s1254_s15, 1 }
   0xf   : > { %p1317_p10 = scmp.lt.s32.totalorder %s1566_s14, 2  ;;  %s113_s24 = sand.u32 1, %s1562_s13  }
  0x10   : > { %p1686_p11 = por %p84_p7, %p54_p0  ;;  %p1690_p12 = por %p90_p8, %p60_p3 }
  0x11   : > { %s1287_s25 = sshll.u32 %s1566_s14, 8  ;;  %s1257_s26 = sshll.u32 %s113_s24, 4 }
  0x12   : > { %s2147_s22 = scalar_select %p1686_p11, 1, 0 }
  0x13   : > { %s2148_s23 = scalar_select %p1690_p12, 1, 0 }
  0x14   : > { %s1699_s29 = scalar_lea.hbm %s2142_s1, %s1287_s25  ;;  %s117_s30 = scalar_lea.vmem [#allocation3], %s1257_s26 }
  0x15   : > { %s124_s3 = sshll.u32 %s117_s30, 4  ;;  %p1703_p13 = pnand %p1317_p10, %p1675_p5  ;;  %s1707_s3 = int_to_ptr.vmem [resolvable:$true] %s124_s3 }
  0x16   : > { %s1709_s5 = scalar_lea.sflag [#allocation4], %s113_s24  ;;  %s1470_s6 = scalar_lea.hbm %s1699_s29, 256 }
  0x17   : > { %p1471_p0 = scmp.ne.s32.totalorder %s1699_s29, %s1470_s6  ;;  %p1472_p1 = pneg %p1703_p13 }
  0x18   : > { %s1475_s9 = scalar_lea.hbm %s2142_s1, 512  ;;  %p1476_p4 = scmp.lt.u32.totalorder %s1699_s29, %s2142_s1 }
  0x19   : > { %p1473_p2 = pnand %p1472_p1, %p1471_p0  ;;  %p1477_p5 = scmp.lt.u32.totalorder %s1475_s9, %s1470_s6 }
  0x1a   : > { %p1479_p8 = scmp.lt.u32.totalorder %s1470_s6, %s1699_s29 }
  0x1b   : > { %p1474_p3 = pneg %p1473_p2  ;;  %p1478_p7 = por %p1477_p5, %p1476_p4 }
  0x1d   : > { %p1480_p10 = por %p1479_p8, %p1478_p7 }
  0x1f   : > { %p1481_p9 = pnand %p1480_p10, %p1474_p3 }
  0x21   : > { %1484 = shalt.err (!%p1481_p9)
}
  0x22   : > { %s1485_s17 = scalar_lea.vmem %s1707_s3, 256  ;;  %s1568_s18 = smov [#allocation3]  }
  0x23   : > { %p1486_p0 = scmp.ne.s32.totalorder %s1707_s3, %s1485_s17  ;;  %s1490_s20 = sshll.u32 %s1568_s18, 4  ;;  %s1491_s20 = int_to_ptr.vmem [resolvable:$false] %s1490_s20 }
  0x24   : > { %s1492_s24 = scalar_lea.vmem %s1491_s20, 512  ;;  %p1493_p11 = scmp.lt.s32.totalorder %s1707_s3, %s1491_s20 }
  0x25   : > { %p1488_p2 = pnand %p1486_p0, %p1472_p1  ;;  %p1494_p4 = scmp.lt.s32.totalorder %s1492_s24, %s1485_s17 }
  0x27   : > { %p1489_p12 = pneg %p1488_p2  ;;  %p1495_p5 = por %p1494_p4, %p1493_p11 }
  0x29   : > { %p1496_p7 = pnand %p1495_p5, %p1489_p12 }
  0x2b   : > { %1499 = shalt.err (!%p1496_p7)
}
  0x2c   : > { %s1569_s25 = smov 128   ;;  %s1570_s26 = smov 8  }
  0x2d   : > { %1312 = dma.hbm_to_vmem [thread:$0]  (!%p1703_p13), %s1699_s29, 256, %s1707_s3, %s1709_s5, %s1569_s25, %s1569_s25, %s1570_s26  }
  0x2e   : > { %p1260_p9 = scmp.ge.s32.totalorder %s1566_s14, 1  ;;  %p132_p1 = scmp.lt.s32.totalorder %s1566_s14, 3 }
  0x30   : > { %p133_p3 = pnand %p1260_p9, %p132_p1 }
  0x31   : > { %s1740_s27 = sand.u32 (!%p133_p3), 1, %s1558_s12  }
  0x32   : > { %136 = sbr.rel (%p133_p3) target bundleno = 4288 (0x10c0), region = 28  ;;  %s1261_s28 = sshll.u32 (!%p133_p3), %s1740_s27, 4 }
  0x33   : > { %s139_s30 = scalar_lea.sflag (!%p133_p3), [#allocation4], %s1740_s27  ;;  %s1744_s6 = scalar_lea.vmem (!%p133_p3), [#allocation3], %s1261_s28 }
  0x39   : > { %1545 = dma.done.wait (%p1679_p6), %s139_s30, 256  }
  0x3a   : > { %1547 = vsyncadd (%p1679_p6), %s139_s30, 4294967040  ;;  %vm179_vm0 = vcmask 523264   ;;  %v163_v0 = vld [vmem:[%s1744_s6] sm:$0xff]  ;;  %v164_v1 = vld [vmem:[%s1744_s6 + $0x8] sm:$0xff]  ;;  %v1571_v3 = vmov 0   ;;  %v165_v4 = vlaneseq  ;;  %s1757_s21 = sld [smem:[#allocation2]] }
  0x3b   : > { %vm1300_vm1 = vmpackc.low %vm179_vm0, %vm179_vm0  ;;  %v1299_v2 = vpack.c.bf16 %v164_v1, %v163_v0  ;;  %1296 = vmatprep.mubr.msk.f32.mxu0 %vm179_vm0, %v163_v0  ;;  %1399 = vset.pattern.permute.xlu0 %v1571_v3  ;;  %v1572_v8 = vmov 0.0   ;;  %v1573_v20 = vmov 1   ;;  %s1574_s29 = smov 127   ;;  %v1575_v30 = vmov 2   ;;  %s1576_s3 = smov 1  }
  0x3c   : > { %v1759_v5 = vand.u32 127, %v165_v4  ;;  %v1761_v6 = vshrl.u32 %v165_v4, 7  ;;  %1400 = vset.pattern.permute.xlu1 %v1573_v20  ;;  %s1577_s4 = smov 126   ;;  %v1578_v47 = vmov 3   ;;  %s1579_s5 = smov 2  }
  0x3d   : > { %1301 = vmatprep.subr.msk.bf16.mxu0 %vm1300_vm1, %v1299_v2  ;;  %s1580_s7 = smov 125   ;;  %s1582_s8 = smov 3  }
  0x3e   : > { %1304 = vmatpush3.bf16.xpose.msk.msra.mxu0 %vm1300_vm1, %v1299_v2  ;;  %vm170_vm2 = vcmp.eq.s32.totalorder %v1761_v6, %v1759_v5  ;;  %vm269_vm3 = vcmp.eq.s32.totalorder %v1761_v6, 0  ;;  %v1773_v14 = vsub.s32 0, %v1761_v6  ;;  %vm315_vm4 = vcmp.eq.s32.totalorder %v1761_v6, 1  ;;  %s1583_s9 = smov 124   ;;  %s1584_s10 = smov 4  }
  0x3f   : > { %v1262_v9 = vsel %vm170_vm2, 1.0, %v1572_v8  ;;  %v1268_v15 = vsel %vm269_vm3, 1.0, %v1572_v8  ;;  %v1269_v26 = vsel %vm315_vm4, 1.0, %v1572_v8  ;;  %v1792_v31 = vsub.s32 1, %v1761_v6  ;;  %s1585_s15 = smov 123   ;;  %s1587_s17 = smov 5  }
  0x40   : > { %v176_v7 = vstv %s1757_s21  ;;  %vm373_vm5 = vcmp.eq.s32.totalorder %v1761_v6, 2  ;;  %v1809_v50 = vsub.s32 2, %v1761_v6  ;;  %vm431_vm6 = vcmp.eq.s32.totalorder %v1761_v6, 3  ;;  %s1588_s18 = smov 122   ;;  %s1591_s20 = smov 6  }
  0x41   : > { %v177_v10 = vmul.f32 %v1262_v9, %v176_v7  ;;  %v1270_v43 = vsel %vm373_vm5, 1.0, %v1572_v8  ;;  %v1271_v61 = vsel %vm431_vm6, 1.0, %v1572_v8  ;;  %v1821_v63 = vadd.s32 8, %v1761_v6  ;;  %s1592_s24 = smov 121   ;;  %s1594_s25 = smov 7  }
  0x42   : > { %vm489_vm8 = vcmp.eq.s32.totalorder %v1761_v6, 4  ;;  %vm547_vm9 = vcmp.eq.s32.totalorder %v1761_v6, 5  ;;  %vm605_vm10 = vcmp.eq.s32.totalorder %v1761_v6, 6  ;;  %s1595_s26 = smov 120   ;;  %s1597_s28 = smov 8   ;;  %vm663_vm15 = vcmp.eq.s32.totalorder %v1761_v6, 7 }
  0x43   : > { %vm171_vm7 = vcmp.eq.s32.totalorder %v1821_v63, %v1759_v5  ;;  %vm722_vm11 = vcmp.eq.s32.totalorder %v1821_v63, 8  ;;  %vm780_vm12 = vcmp.eq.s32.totalorder %v1821_v63, 9  ;;  %s1598_s30 = smov 119   ;;  %s1600_s21 = smov 9   ;;  %vm838_vm13 = vcmp.eq.s32.totalorder %v1821_v63, 10 }
  0x44   : > { %v1263_v2 = vsel %vm171_vm7, 1.0, %v1572_v8  ;;  %vm896_vm14 = vcmp.eq.s32.totalorder %v1821_v63, 11  ;;  %vm954_vm1 = vcmp.eq.s32.totalorder %v1821_v63, 12  ;;  %vm1012_vm2 = vcmp.eq.s32.totalorder %v1821_v63, 13  ;;  %p2150_p11 = scmp.ne.s32.totalorder %s2147_s22, 0 }
  0x45   : > { %1297 = vmatmul.mubr.msk.f32.vlgmr.msra.gmra.mrb[0].mxu0 %vm179_vm0, %v164_v1  ;;  %v178_v4 = vmul.f32 %v1263_v2, %v176_v7  ;;  %vm1070_vm3 = vcmp.eq.s32.totalorder %v1821_v63, 14  ;;  %vm1123_vm4 = vcmp.eq.s32.totalorder %v1821_v63, 15  ;;  %vm1173_vm5 = vcmask 516096  }
 0x118   : > { %v1769_v11 = vpop.f32.mrb[0].mxu0 }
 0x119   : > { %v252_v12 = vpop.f32.mrb[1].mxu0  ;;  %v1833_v9 = vadd.f32 %v1769_v11, %v178_v4 }
 0x11a   : > { %v253_v13 = vadd.f32 %v252_v12, %v177_v10  ;;  %v1581_v10 = vmov 4  }
 0x11c   : > { %1438 = vrcp.f32 %v253_v13  ;;  %v275_v17 = vsub.f32 %v253_v13, %v1268_v15 }
 0x126   : > { %v1439_v16 = vpop.eup %1438 }
 0x127   : > { %265 = vperm.xlu0 %1399, %v1439_v16   ;;  %v1777_v18 = vrot.slane %v1439_v16, %v1773_v14 }
 0x129   : > { %v299_v19 = vmul.f32 %v1777_v18, %v275_v17 }
 0x12b   : > { %279 = vperm.xlu0 %1399, %v275_v17   ;;  %v301_v32 = vsub.f32 1.0, %v299_v19 }
 0x12f   : > { %1401 = vset.pattern.permute.xlu0 %v1573_v20 }
 0x1a6   : > { %v266_v21 = vpop.permute.xlu0 %265 }
 0x1a7   : > { %v268_v22 = vmul.f32 %v266_v21, %v253_v13 }
 0x1a9   : > { %v1783_v23 = vrot.slane %v268_v22, %v1773_v14 }
 0x1aa   : > { %v280_v24 = vpop.permute.xlu0 %279 }
 0x1ab   : > { %v291_v25 = vmul.f32 %v1783_v23, %v280_v24 }
 0x1ad   : > { %v293_v27 = vsub.f32 %v253_v13, %v291_v25  ;;  %v1838_v13 = vsub.s32 3, %v1761_v6  ;;  %v1272_v25 = vsel %vm489_vm8, 1.0, %v1572_v8 }
 0x1af   : > { %v321_v28 = vsub.f32 %v293_v27, %v1269_v26  ;;  %1440 = vrcp.f32 %v293_v27 }
 0x1b1   : > { %325 = vperm.xlu0 %1401, %v321_v28  }
 0x1b5   : > { %1403 = vset.pattern.permute.xlu0 %v1575_v30 }
 0x1b9   : > { %v1441_v29 = vpop.eup %1440 }
 0x1ba   : > { %311 = vrot.lane.b32.xlu1 %v1441_v29, %s1574_s29 }
 0x1be   : > { %307 = vperm.xlu1 %1400, %v1441_v29  }
 0x1c2   : > { %1402 = vset.pattern.permute.xlu1 %v1575_v30 }
 0x22c   : > { %v312_v33 = vpop.permute.xlu1 %311 }
 0x22d   : > { %v314_v34 = vmul.f32 %v312_v33, %v301_v32 }
 0x22f   : > { %v344_v35 = vrot.slane %v314_v34, %v1792_v31 }
 0x230   : > { %v326_v39 = vpop.permute.xlu0 %325 }
 0x231   : > { %346 = vrot.lane.b32.xlu1 %v344_v35, %s1576_s3  ;;  %s1603_s3 = smov 10  }
 0x23d   : > { %v308_v36 = vpop.permute.xlu1 %307 }
 0x23e   : > { %v310_v37 = vmul.f32 %v308_v36, %v293_v27 }
 0x240   : > { %v1796_v38 = vrot.slane %v310_v37, %v1792_v31 }
 0x242   : > { %v337_v40 = vmul.f32 %v1796_v38, %v326_v39 }
 0x244   : > { %v339_v41 = vsub.f32 %v293_v27, %v337_v40 }
 0x246   : > { %1442 = vrcp.f32 %v339_v41  ;;  %v379_v44 = vsub.f32 %v339_v41, %v1270_v43 }
 0x250   : > { %v1443_v42 = vpop.eup %1442 }
 0x251   : > { %369 = vrot.lane.b32.xlu0 %v1443_v42, %s1577_s4 }
 0x255   : > { %383 = vperm.xlu0 %1403, %v379_v44  }
 0x259   : > { %1405 = vset.pattern.permute.xlu0 %v1578_v47 }
 0x2a3   : > { %v1802_v45 = vpop.permute.xlu1 %346 }
 0x2a4   : > { %v349_v46 = vmul.f32 %v1802_v45, %v321_v28 }
 0x2a6   : > { %353 = vrot.lane.b32.xlu1 %v349_v46, %s1574_s29 }
 0x2aa   : > { %365 = vperm.xlu1 %1402, %v1443_v42  }
 0x2ae   : > { %1404 = vset.pattern.permute.xlu1 %v1578_v47 }
 0x2c3   : > { %v370_v51 = vpop.permute.xlu0 %369 }
 0x2d4   : > { %v384_v57 = vpop.permute.xlu0 %383 }
 0x318   : > { %v354_v48 = vpop.permute.xlu1 %353 }
 0x319   : > { %v359_v49 = vsub.f32 %v301_v32, %v354_v48 }
 0x31b   : > { %v372_v52 = vmul.f32 %v370_v51, %v359_v49  ;;  %v1586_v51 = vmov 5  }
 0x31d   : > { %v402_v53 = vrot.slane %v372_v52, %v1809_v50  ;;  %v1273_v52 = vsel %vm547_vm9, 1.0, %v1572_v8 }
 0x31f   : > { %404 = vrot.lane.b32.xlu1 %v402_v53, %s1579_s5  ;;  %s1606_s5 = smov 11  }
 0x329   : > { %v366_v54 = vpop.permute.xlu1 %365 }
 0x32a   : > { %v368_v55 = vmul.f32 %v366_v54, %v339_v41 }
 0x32c   : > { %v1813_v56 = vrot.slane %v368_v55, %v1809_v50 }
 0x32e   : > { %v395_v58 = vmul.f32 %v1813_v56, %v384_v57 }
 0x330   : > { %v397_v59 = vsub.f32 %v339_v41, %v395_v58 }
 0x332   : > { %1444 = vrcp.f32 %v397_v59  ;;  %v437_v62 = vsub.f32 %v397_v59, %v1271_v61 }
 0x33c   : > { %v1445_v60 = vpop.eup %1444 }
 0x33d   : > { %427 = vrot.lane.b32.xlu0 %v1445_v60, %s1580_s7 }
 0x341   : > { %441 = vperm.xlu0 %1405, %v437_v62  }
 0x345   : > { %1407 = vset.pattern.permute.xlu0 %v1573_v20 }
 0x391   : > { %v1825_v0 = vpop.permute.xlu1 %404 }
 0x392   : > { %v407_v1 = vmul.f32 %v1825_v0, %v379_v44 }
 0x394   : > { %411 = vrot.lane.b32.xlu1 %v407_v1, %s1577_s4 }
 0x398   : > { %423 = vperm.xlu1 %1404, %v1445_v60  }
 0x39c   : > { %1406 = vset.pattern.permute.xlu1 %v1571_v3 }
 0x39d   : > { %284 = vperm.xlu1 %1406, %v1833_v9  }
 0x3a1   : > { %1408 = vset.pattern.permute.xlu1 %v1581_v10 }
 0x3af   : > { %v428_v15 = vpop.permute.xlu0 %427 }
 0x3c0   : > { %v442_v20 = vpop.permute.xlu0 %441 }
 0x406   : > { %v412_v5 = vpop.permute.xlu1 %411 }
 0x407   : > { %v417_v12 = vsub.f32 %v359_v49, %v412_v5 }
 0x409   : > { %v430_v16 = vmul.f32 %v428_v15, %v417_v12 }
 0x40b   : > { %v460_v17 = vrot.slane %v430_v16, %v1838_v13 }
 0x40d   : > { %462 = vrot.lane.b32.xlu1 %v460_v17, %s1582_s8  ;;  %s1609_s8 = smov 12  }
 0x417   : > { %v424_v7 = vpop.permute.xlu1 %423 }
 0x418   : > { %v426_v11 = vmul.f32 %v424_v7, %v397_v59 }
 0x41a   : > { %v1842_v19 = vrot.slane %v426_v11, %v1838_v13 }
 0x41c   : > { %v453_v21 = vmul.f32 %v1842_v19, %v442_v20  ;;  %v285_v27 = vpop.permute.xlu1 %284  ;;  %v1589_v20 = vmov 6  }
 0x41d   : > { %v292_v29 = vmul.f32 %v1783_v23, %v285_v27 }
 0x41e   : > { %v455_v22 = vsub.f32 %v397_v59, %v453_v21  ;;  %v1274_v21 = vsel %vm605_vm10, 1.0, %v1572_v8 }
 0x41f   : > { %v1855_v33 = vsub.f32 %v1833_v9, %v292_v29  ;;  %v1590_v29 = vmov 7  }
 0x420   : > { %1446 = vrcp.f32 %v455_v22  ;;  %v495_v26 = vsub.f32 %v455_v22, %v1272_v25 }
 0x42a   : > { %v1447_v24 = vpop.eup %1446 }
 0x42b   : > { %485 = vrot.lane.b32.xlu1 %v1447_v24, %s1583_s9 }
 0x42f   : > { %481 = vperm.xlu1 %1408, %v1447_v24  }
 0x433   : > { %499 = vperm.xlu1 %1408, %v495_v26  }
 0x437   : > { %1409 = vset.pattern.permute.xlu1 %v1575_v30  ;;  %v1860_v30 = vsub.s32 4, %v1761_v6 }
 0x47f   : > { %v1849_v28 = vpop.permute.xlu1 %462 }
 0x480   : > { %v465_v32 = vmul.f32 %v1849_v28, %v437_v62  ;;  %v1885_v62 = vsub.s32 5, %v1761_v6 }
 0x482   : > { %469 = vrot.lane.b32.xlu0 %v465_v32, %s1580_s7 }
 0x486   : > { %330 = vperm.xlu0 %1407, %v1855_v33  }
 0x48a   : > { %1410 = vset.pattern.permute.xlu0 %v1578_v47 }
 0x49d   : > { %v486_v34 = vpop.permute.xlu1 %485 }
 0x4ae   : > { %v482_v35 = vpop.permute.xlu1 %481 }
 0x4af   : > { %v484_v36 = vmul.f32 %v482_v35, %v455_v22 }
 0x4b1   : > { %v1863_v23 = vrot.slane %v484_v36, %v1860_v30  ;;  %v1902_v36 = vsub.s32 6, %v1761_v6 }
 0x4b2   : > { %v500_v41 = vpop.permute.xlu1 %499 }
 0x4b3   : > { %v511_v43 = vmul.f32 %v1863_v23, %v500_v41 }
 0x4b5   : > { %v513_v44 = vsub.f32 %v455_v22, %v511_v43 }
 0x4b7   : > { %1448 = vrcp.f32 %v513_v44  ;;  %v553_v53 = vsub.f32 %v513_v44, %v1273_v52 }
 0x4c1   : > { %v1449_v49 = vpop.eup %1448 }
 0x4f4   : > { %v470_v37 = vpop.permute.xlu0 %469 }
 0x4f5   : > { %v475_v39 = vsub.f32 %v417_v12, %v470_v37 }
 0x4f7   : > { %v488_v40 = vmul.f32 %v486_v34, %v475_v39 }
 0x4f9   : > { %v518_v42 = vrot.slane %v488_v40, %v1860_v30 }
 0x4fb   : > { %520 = vrot.lane.b32.xlu0 %v518_v42, %s1584_s10  ;;  %s1611_s10 = smov 13  }
 0x505   : > { %v331_v46 = vpop.permute.xlu0 %330 }
 0x506   : > { %v338_v47 = vmul.f32 %v1796_v38, %v331_v46 }
 0x508   : > { %v1869_v48 = vsub.f32 %v1855_v33, %v338_v47 }
 0x50a   : > { %388 = vperm.xlu1 %1409, %v1869_v48  }
 0x50e   : > { %543 = vrot.lane.b32.xlu1 %v1449_v49, %s1585_s15 }
 0x50f   : > { %1411 = vset.pattern.permute.xlu1 %v1586_v51 }
 0x512   : > { %539 = vperm.xlu1 %1411, %v1449_v49  }
 0x516   : > { %557 = vperm.xlu1 %1411, %v553_v53  }
 0x51a   : > { %1412 = vset.pattern.permute.xlu1 %v1581_v10 }
 0x56d   : > { %v1875_v38 = vpop.permute.xlu0 %520 }
 0x56e   : > { %v523_v54 = vmul.f32 %v1875_v38, %v495_v26 }
 0x570   : > { %527 = vrot.lane.b32.xlu0 %v523_v54, %s1583_s9  ;;  %v350_v54 = vmul.f32 %v1802_v45, %v1855_v33 }
 0x589   : > { %v389_v55 = vpop.permute.xlu1 %388 }
 0x58a   : > { %v396_v57 = vmul.f32 %v1813_v56, %v389_v55 }
 0x58c   : > { %v1881_v58 = vsub.f32 %v1869_v48, %v396_v57 }
 0x58d   : > { %v544_v61 = vpop.permute.xlu1 %543 }
 0x58e   : > { %446 = vperm.xlu0 %1410, %v1881_v58   ;;  %v466_v55 = vmul.f32 %v1849_v28, %v1881_v58 }
 0x591   : > { %v540_v4 = vpop.permute.xlu1 %539 }
 0x592   : > { %1413 = vset.pattern.permute.xlu0 %v1586_v51  ;;  %v542_v10 = vmul.f32 %v540_v4, %v513_v44 }
 0x594   : > { %v568_v56 = vrot.slane %v542_v10, %v1885_v62  ;;  %v408_v10 = vmul.f32 %v1825_v0, %v1869_v48 }
 0x595   : > { %v558_v5 = vpop.permute.xlu1 %557 }
 0x596   : > { %v569_v12 = vmul.f32 %v568_v56, %v558_v5 }
 0x598   : > { %v571_v15 = vsub.f32 %v513_v44, %v569_v12 }
 0x59a   : > { %1450 = vrcp.f32 %v571_v15  ;;  %v611_v22 = vsub.f32 %v571_v15, %v1274_v21 }
 0x5a4   : > { %v1451_v11 = vpop.eup %1450 }
 0x5e2   : > { %v528_v59 = vpop.permute.xlu0 %527 }
 0x5e3   : > { %v533_v60 = vsub.f32 %v475_v39, %v528_v59 }
 0x5e5   : > { %v546_v1 = vmul.f32 %v544_v61, %v533_v60 }
 0x5e7   : > { %v576_v2 = vrot.slane %v546_v1, %v1885_v62  ;;  %v1593_v1 = vmov 8  }
 0x5e9   : > { %578 = vrot.lane.b32.xlu0 %v576_v2, %s1587_s17  ;;  %v1924_v2 = vsub.s32 7, %v1761_v6  ;;  %s1614_s17 = smov 14  }
 0x60d   : > { %v447_v16 = vpop.permute.xlu0 %446 }
 0x60e   : > { %v454_v17 = vmul.f32 %v1842_v19, %v447_v16 }
 0x610   : > { %v1891_v7 = vsub.f32 %v1881_v58, %v454_v17 }
 0x612   : > { %504 = vperm.xlu1 %1412, %v1891_v7  }
 0x616   : > { %601 = vrot.lane.b32.xlu1 %v1451_v11, %s1588_s18 }
 0x617   : > { %1414 = vset.pattern.permute.xlu1 %v1589_v20 }
 0x61a   : > { %597 = vperm.xlu1 %1414, %v1451_v11  }
 0x61e   : > { %615 = vperm.xlu1 %1414, %v611_v22  }
 0x65b   : > { %v579_v24 = vpop.permute.xlu0 %578 }
 0x65c   : > { %v581_v19 = vmul.f32 %v579_v24, %v553_v53 }
 0x65e   : > { %585 = vrot.lane.b32.xlu0 %v581_v19, %s1585_s15 }
 0x691   : > { %v505_v25 = vpop.permute.xlu1 %504 }
 0x692   : > { %v512_v26 = vmul.f32 %v1863_v23, %v505_v25 }
 0x694   : > { %v514_v27 = vsub.f32 %v1891_v7, %v512_v26 }
 0x695   : > { %v602_v35 = vpop.permute.xlu1 %601 }
 0x696   : > { %562 = vperm.xlu0 %1413, %v514_v27   ;;  %v582_v57 = vmul.f32 %v579_v24, %v514_v27  ;;  %v300_v24 = vmul.f32 %v1777_v18, %v1833_v9 }
 0x698   : > { %v302_v25 = vsub.f32 1.0, %v300_v24  ;;  %v1602_v24 = vmov 11  }
 0x699   : > { %v598_v40 = vpop.permute.xlu1 %597 }
 0x69a   : > { %1415 = vset.pattern.permute.xlu0 %v1590_v29  ;;  %v600_v41 = vmul.f32 %v598_v40, %v571_v15 }
 0x69c   : > { %v626_v23 = vrot.slane %v600_v41, %v1902_v36 }
 0x69d   : > { %v616_v42 = vpop.permute.xlu1 %615 }
 0x69e   : > { %v627_v43 = vmul.f32 %v626_v23, %v616_v42 }
 0x6a0   : > { %v1906_v44 = vsub.f32 %v571_v15, %v627_v43 }
 0x6a2   : > { %1452 = vrcp.f32 %v1906_v44 }
 0x6ac   : > { %v1453_v51 = vpop.eup %1452 }
 0x6d0   : > { %v586_v32 = vpop.permute.xlu0 %585 }
 0x6d1   : > { %v591_v34 = vsub.f32 %v533_v60, %v586_v32 }
 0x6d3   : > { %v604_v37 = vmul.f32 %v602_v35, %v591_v34 }
 0x6d5   : > { %v634_v39 = vrot.slane %v604_v37, %v1902_v36 }
 0x6d7   : > { %636 = vrot.lane.b32.xlu0 %v634_v39, %s1591_s20  ;;  %s1616_s20 = smov 15  }
 0x715   : > { %v563_v46 = vpop.permute.xlu0 %562 }
 0x716   : > { %v570_v47 = vmul.f32 %v568_v56, %v563_v46  ;;  %v524_v56 = vmul.f32 %v1875_v38, %v1891_v7  ;;  %v1276_v38 = vsel %vm722_vm11, 1.0, %v1572_v8 }
 0x718   : > { %v572_v49 = vsub.f32 %v514_v27, %v570_v47 }
 0x71a   : > { %620 = vperm.xlu1 %1414, %v572_v49  }
 0x71e   : > { %659 = vrot.lane.b32.xlu1 %v1453_v51, %s1592_s24 }
 0x71f   : > { %1416 = vset.pattern.permute.xlu1 %v1590_v29 }
 0x749   : > { %v637_v52 = vpop.permute.xlu0 %636 }
 0x74a   : > { %v639_v53 = vmul.f32 %v637_v52, %v611_v22  ;;  %v640_v5 = vmul.f32 %v637_v52, %v572_v49  ;;  %v1596_v22 = vmov 9  }
 0x74c   : > { %643 = vrot.lane.b32.xlu0 %v639_v53, %s1588_s18 }
 0x750   : > { %655 = vperm.xlu0 %1415, %v1453_v51  }
 0x754   : > { %355 = vrot.lane.b32.xlu0 %v350_v54, %s1574_s29  ;;  %s1601_s29 = smov 118  }
 0x755   : > { %1417 = vset.pattern.permute.xlu0 %v1593_v1 }
 0x758   : > { %471 = vrot.lane.b32.xlu0 %v466_v55, %s1580_s7  ;;  %s1607_s7 = smov 116  }
 0x75c   : > { %587 = vrot.lane.b32.xlu0 %v582_v57, %s1585_s15  ;;  %s1612_s15 = smov 114  }
 0x799   : > { %v621_v59 = vpop.permute.xlu1 %620 }
 0x79a   : > { %v628_v60 = vmul.f32 %v626_v23, %v621_v59  ;;  %v1277_v59 = vsel %vm780_vm12, 1.0, %v1572_v8 }
 0x79c   : > { %v630_v61 = vsub.f32 %v572_v49, %v628_v60 }
 0x79d   : > { %v660_v28 = vpop.permute.xlu1 %659 }
 0x79e   : > { %678 = vperm.xlu1 %1416, %v630_v61  }
 0x7a2   : > { %1418 = vset.pattern.permute.xlu1 %v1593_v1 }
 0x7be   : > { %v644_v45 = vpop.permute.xlu0 %643 }
 0x7bf   : > { %v1921_v33 = vsub.f32 %v591_v34, %v644_v45  ;;  %v1599_v45 = vmov 10  }
 0x7c1   : > { %v662_v58 = vmul.f32 %v660_v28, %v1921_v33 }
 0x7c3   : > { %v692_v4 = vrot.slane %v662_v58, %v1924_v2 }
 0x7c5   : > { %694 = vrot.lane.b32.xlu1 %v692_v4, %s1594_s25  ;;  %s161_s25 = scalar_lea.vmem [#allocation6], %s1740_s27 }
 0x7c9   : > { %413 = vrot.lane.b32.xlu1 %v408_v10, %s1577_s4  ;;  %s1604_s4 = smov 117  }
 0x7cd   : > { %529 = vrot.lane.b32.xlu1 %v524_v56, %s1583_s9  ;;  %s1610_s9 = smov 115  }
 0x7cf   : > { %v656_v12 = vpop.permute.xlu0 %655 }
 0x7d0   : > { %v658_v15 = vmul.f32 %v656_v12, %v1906_v44 }
 0x7d1   : > { %645 = vrot.lane.b32.xlu1 %v640_v5, %s1588_s18  ;;  %s1615_s18 = smov 113  }
 0x7d2   : > { %v1937_v16 = vrot.slane %v658_v15, %v1924_v2 }
 0x7d3   : > { %v356_v19 = vpop.permute.xlu0 %355 }
 0x7d4   : > { %v360_v27 = vsub.f32 %v302_v25, %v356_v19 }
 0x7d7   : > { %v472_v34 = vpop.permute.xlu0 %471 }
 0x7db   : > { %v588_v40 = vpop.permute.xlu0 %587 }
 0x81d   : > { %v679_v17 = vpop.permute.xlu1 %678 }
 0x81e   : > { %v686_v11 = vmul.f32 %v1937_v16, %v679_v17 }
 0x820   : > { %v688_v0 = vsub.f32 %v630_v61, %v686_v11 }
 0x822   : > { %1454 = vrcp.f32 %v688_v0  ;;  %v728_v7 = vsub.f32 %v688_v0, %v1276_v38  ;;  %v1278_v38 = vsel %vm838_vm13, 1.0, %v1572_v8 }
 0x82c   : > { %v1455_v48 = vpop.eup %1454 }
 0x82d   : > { %717 = vrot.lane.b32.xlu1 %v1455_v48, %s1595_s26 }
 0x831   : > { %736 = vperm.xlu1 %1418, %v728_v7  }
 0x835   : > { %1420 = vset.pattern.permute.xlu1 %v1596_v22 }
 0x837   : > { %v1943_v20 = vpop.permute.xlu1 %694 }
 0x838   : > { %v698_v21 = vmul.f32 %v1943_v20, %v630_v61 }
 0x83a   : > { %703 = vrot.lane.b32.xlu0 %v698_v21, %s1592_s24 }
 0x83b   : > { %v414_v26 = vpop.permute.xlu1 %413 }
 0x83c   : > { %v418_v32 = vsub.f32 %v360_v27, %v414_v26 }
 0x83e   : > { %713 = vperm.xlu0 %1417, %v1455_v48   ;;  %v476_v35 = vsub.f32 %v418_v32, %v472_v34 }
 0x83f   : > { %v530_v37 = vpop.permute.xlu1 %529 }
 0x840   : > { %v534_v39 = vsub.f32 %v476_v35, %v530_v37 }
 0x842   : > { %1419 = vset.pattern.permute.xlu0 %v1596_v22  ;;  %v592_v41 = vsub.f32 %v534_v39, %v588_v40 }
 0x843   : > { %v646_v23 = vpop.permute.xlu1 %645 }
 0x844   : > { %v650_v42 = vsub.f32 %v592_v41, %v646_v23 }
 0x89f   : > { %v718_v47 = vpop.permute.xlu1 %717 }
 0x8ac   : > { %v704_v43 = vpop.permute.xlu0 %703 }
 0x8ad   : > { %v708_v46 = vsub.f32 %v650_v42, %v704_v43  ;;  %v1279_v42 = vsel %vm896_vm14, 1.0, %v1572_v8 }
 0x8af   : > { %v720_v49 = vmul.f32 %v718_v47, %v708_v46  ;;  %v1275_v47 = vsel %vm663_vm15, 1.0, %v1572_v8 }
 0x8b0   : > { %v737_v53 = vpop.permute.xlu1 %736 }
 0x8b1   : > { %v750_v51 = vrot.slane %v720_v49, %v1773_v14  ;;  %v1994_v49 = vsub.f32 %v1906_v44, %v1275_v47 }
 0x8b3   : > { %752 = vrot.lane.b32.xlu1 %v750_v51, %s1597_s28 }
 0x8bd   : > { %v714_v18 = vpop.permute.xlu0 %713 }
 0x8be   : > { %v716_v9 = vmul.f32 %v714_v18, %v688_v0 }
 0x8c0   : > { %v1953_v52 = vrot.slane %v716_v9, %v1773_v14  ;;  %v1605_v9 = vmov 12  }
 0x8c2   : > { %v744_v54 = vmul.f32 %v1953_v52, %v737_v53 }
 0x8c4   : > { %v746_v55 = vsub.f32 %v688_v0, %v744_v54 }
 0x8c6   : > { %1456 = vrcp.f32 %v746_v55  ;;  %v786_v60 = vsub.f32 %v746_v55, %v1277_v59 }
 0x8d0   : > { %v1457_v57 = vpop.eup %1456 }
 0x8d1   : > { %775 = vrot.lane.b32.xlu1 %v1457_v57, %s1598_s30 }
 0x8d5   : > { %794 = vperm.xlu1 %1420, %v786_v60  }
 0x8d9   : > { %1422 = vset.pattern.permute.xlu1 %v1599_v45 }
 0x925   : > { %v1959_v61 = vpop.permute.xlu1 %752 }
 0x926   : > { %v756_v14 = vmul.f32 %v1959_v61, %v728_v7 }
 0x928   : > { %761 = vrot.lane.b32.xlu0 %v756_v14, %s1595_s26 }
 0x92c   : > { %771 = vperm.xlu0 %1419, %v1457_v57  }
 0x930   : > { %1421 = vset.pattern.permute.xlu0 %v1599_v45 }
 0x943   : > { %v776_v4 = vpop.permute.xlu1 %775 }
 0x954   : > { %v795_v17 = vpop.permute.xlu1 %794 }
 0x99a   : > { %v762_v28 = vpop.permute.xlu0 %761 }
 0x99b   : > { %v766_v58 = vsub.f32 %v708_v46, %v762_v28 }
 0x99d   : > { %v778_v10 = vmul.f32 %v776_v4, %v766_v58 }
 0x99f   : > { %v808_v56 = vrot.slane %v778_v10, %v1792_v31 }
 0x9a1   : > { %810 = vrot.lane.b32.xlu1 %v808_v56, %s1600_s21  ;;  %s1176_s21 = scalar_lea.sflag [#allocation5], %s1740_s27 }
 0x9ab   : > { %v772_v5 = vpop.permute.xlu0 %771 }
 0x9ac   : > { %v774_v12 = vmul.f32 %v772_v5, %v746_v55 }
 0x9ae   : > { %v1967_v15 = vrot.slane %v774_v12, %v1792_v31  ;;  %v1608_v12 = vmov 13  }
 0x9b0   : > { %v802_v11 = vmul.f32 %v1967_v15, %v795_v17 }
 0x9b2   : > { %v804_v0 = vsub.f32 %v746_v55, %v802_v11 }
 0x9b4   : > { %1458 = vrcp.f32 %v804_v0  ;;  %v844_v7 = vsub.f32 %v804_v0, %v1278_v38 }
 0x9be   : > { %v1459_v48 = vpop.eup %1458 }
 0x9bf   : > { %833 = vrot.lane.b32.xlu1 %v1459_v48, %s1601_s29 }
 0x9c3   : > { %852 = vperm.xlu1 %1422, %v844_v7  }
 0x9c7   : > { %1424 = vset.pattern.permute.xlu1 %v1602_v24 }
 0xa13   : > { %v1973_v21 = vpop.permute.xlu1 %810 }
 0xa14   : > { %v814_v31 = vmul.f32 %v1973_v21, %v786_v60 }
 0xa16   : > { %819 = vrot.lane.b32.xlu0 %v814_v31, %s1598_s30 }
 0xa1a   : > { %829 = vperm.xlu0 %1421, %v1459_v48  }
 0xa1e   : > { %1423 = vset.pattern.permute.xlu0 %v1602_v24 }
 0xa31   : > { %v834_v26 = vpop.permute.xlu1 %833 }
 0xa42   : > { %v853_v39 = vpop.permute.xlu1 %852 }
 0xa88   : > { %v820_v19 = vpop.permute.xlu0 %819 }
 0xa89   : > { %v824_v25 = vsub.f32 %v766_v58, %v820_v19 }
 0xa8b   : > { %v836_v27 = vmul.f32 %v834_v26, %v824_v25 }
 0xa8d   : > { %v866_v32 = vrot.slane %v836_v27, %v1809_v50  ;;  %v1281_v27 = vsel %vm1012_vm2, 1.0, %v1572_v8 }
 0xa8f   : > { %868 = vrot.lane.b32.xlu1 %v866_v32, %s1603_s3 }
 0xa99   : > { %v830_v34 = vpop.permute.xlu0 %829 }
 0xa9a   : > { %v832_v35 = vmul.f32 %v830_v34, %v804_v0 }
 0xa9c   : > { %v1981_v37 = vrot.slane %v832_v35, %v1809_v50 }
 0xa9e   : > { %v860_v40 = vmul.f32 %v1981_v37, %v853_v39 }
 0xaa0   : > { %v862_v41 = vsub.f32 %v804_v0, %v860_v40 }
 0xaa2   : > { %1460 = vrcp.f32 %v862_v41  ;;  %v902_v43 = vsub.f32 %v862_v41, %v1279_v42 }
 0xaac   : > { %v1461_v23 = vpop.eup %1460 }
 0xaad   : > { %891 = vrot.lane.b32.xlu1 %v1461_v23, %s1604_s4 }
 0xab1   : > { %910 = vperm.xlu1 %1424, %v902_v43  }
 0xab5   : > { %1427 = vset.pattern.permute.xlu1 %v1605_v9 }
 0xb01   : > { %v1987_v46 = vpop.permute.xlu1 %868 }
 0xb02   : > { %v872_v50 = vmul.f32 %v1987_v46, %v844_v7 }
 0xb04   : > { %877 = vrot.lane.b32.xlu0 %v872_v50, %s1601_s29 }
 0xb08   : > { %887 = vperm.xlu0 %1423, %v1461_v23  }
 0xb0c   : > { %1425 = vset.pattern.permute.xlu0 %v1590_v29 }
 0xb0d   : > { %673 = vperm.xlu0 %1425, %v1994_v49  }
 0xb11   : > { %1426 = vset.pattern.permute.xlu0 %v1593_v1 }
 0xb1f   : > { %v892_v53 = vpop.permute.xlu1 %891 }
 0xb30   : > { %v911_v14 = vpop.permute.xlu1 %910 }
 0xb76   : > { %v878_v51 = vpop.permute.xlu0 %877 }
 0xb77   : > { %v882_v18 = vsub.f32 %v824_v25, %v878_v51 }
 0xb79   : > { %v894_v54 = vmul.f32 %v892_v53, %v882_v18 }
 0xb7b   : > { %v924_v6 = vrot.slane %v894_v54, %v1838_v13 }
 0xb7d   : > { %926 = vrot.lane.b32.xlu1 %v924_v6, %s1606_s5 }
 0xb87   : > { %v888_v55 = vpop.permute.xlu0 %887 }
 0xb88   : > { %v890_v1 = vmul.f32 %v888_v55, %v862_v41 }
 0xb8a   : > { %v2008_v60 = vrot.slane %v890_v1, %v1838_v13  ;;  %v1280_v13 = vsel %vm954_vm1, 1.0, %v1572_v8 }
 0xb8c   : > { %v674_v57 = vpop.permute.xlu0 %673  ;;  %v918_v28 = vmul.f32 %v2008_v60, %v911_v14 }
 0xb8d   : > { %v685_v59 = vmul.f32 %v1937_v16, %v674_v57  ;;  %v1282_v57 = vsel %vm1070_vm3, 1.0, %v1572_v8 }
 0xb8e   : > { %v920_v58 = vsub.f32 %v862_v41, %v918_v28 }
 0xb8f   : > { %v2003_v29 = vsub.f32 %v1906_v44, %v685_v59 }
 0xb90   : > { %1462 = vrcp.f32 %v920_v58 }
 0xb91   : > { %731 = vperm.xlu0 %1426, %v2003_v29  }
 0xb95   : > { %1429 = vset.pattern.permute.xlu0 %v1599_v45  ;;  %v960_v45 = vsub.f32 %v920_v58, %v1280_v13 }
 0xb9a   : > { %v1463_v44 = vpop.eup %1462 }
 0xbef   : > { %v2011_v4 = vpop.permute.xlu1 %926 }
 0xbf0   : > { %v930_v16 = vmul.f32 %v2011_v4, %v902_v43 }
 0xbf2   : > { %935 = vrot.lane.b32.xlu1 %v930_v16, %s1604_s4 }
 0xbf6   : > { %949 = vrot.lane.b32.xlu1 %v1463_v44, %s1607_s7 }
 0xbfa   : > { %945 = vperm.xlu1 %1427, %v1463_v44  }
 0xbfe   : > { %968 = vperm.xlu1 %1427, %v960_v45  }
 0xc02   : > { %1428 = vset.pattern.permute.xlu1 %v1596_v22 }
 0xc10   : > { %v732_v10 = vpop.permute.xlu0 %731 }
 0xc11   : > { %v743_v56 = vmul.f32 %v1953_v52, %v732_v10 }
 0xc13   : > { %v2021_v5 = vsub.f32 %v2003_v29, %v743_v56 }
 0xc15   : > { %789 = vperm.xlu1 %1428, %v2021_v5  }
 0xc19   : > { %1430 = vset.pattern.permute.xlu1 %v1608_v12 }
 0xc64   : > { %v936_v17 = vpop.permute.xlu1 %935 }
 0xc65   : > { %v940_v11 = vsub.f32 %v882_v18, %v936_v17 }
 0xc68   : > { %v950_v0 = vpop.permute.xlu1 %949 }
 0xc69   : > { %v952_v48 = vmul.f32 %v950_v0, %v940_v11 }
 0xc6b   : > { %v982_v38 = vrot.slane %v952_v48, %v1860_v30 }
 0xc6d   : > { %984 = vrot.lane.b32.xlu0 %v982_v38, %s1609_s8 }
 0xc79   : > { %v946_v7 = vpop.permute.xlu1 %945 }
 0xc7a   : > { %v948_v22 = vmul.f32 %v946_v7, %v920_v58 }
 0xc7c   : > { %v2026_v31 = vrot.slane %v948_v22, %v1860_v30 }
 0xc7d   : > { %v969_v52 = vpop.permute.xlu1 %968 }
 0xc7e   : > { %v976_v19 = vmul.f32 %v2026_v31, %v969_v52 }
 0xc80   : > { %v978_v25 = vsub.f32 %v920_v58, %v976_v19 }
 0xc82   : > { %1464 = vrcp.f32 %v978_v25  ;;  %v1018_v32 = vsub.f32 %v978_v25, %v1281_v27  ;;  %v755_v27 = vmul.f32 %v1959_v61, %v2003_v29 }
 0xc8c   : > { %v1465_v26 = vpop.eup %1464 }
 0xc8d   : > { %1007 = vrot.lane.b32.xlu1 %v1465_v26, %s1610_s9 }
 0xc91   : > { %1003 = vperm.xlu1 %1430, %v1465_v26  }
 0xc94   : > { %v790_v30 = vpop.permute.xlu1 %789 }
 0xc95   : > { %1026 = vperm.xlu1 %1430, %v1018_v32   ;;  %v801_v35 = vmul.f32 %v1967_v15, %v790_v30 }
 0xc97   : > { %v2039_v40 = vsub.f32 %v2021_v5, %v801_v35 }
 0xc99   : > { %1431 = vset.pattern.permute.xlu1 %v1602_v24 }
 0xcdf   : > { %v2033_v34 = vpop.permute.xlu0 %984 }
 0xce0   : > { %v988_v39 = vmul.f32 %v2033_v34, %v960_v45 }
 0xce2   : > { %993 = vrot.lane.b32.xlu0 %v988_v39, %s1607_s7 }
 0xce6   : > { %847 = vperm.xlu0 %1429, %v2039_v40  }
 0xcea   : > { %1432 = vset.pattern.permute.xlu0 %v1605_v9 }
 0xcff   : > { %v1008_v41 = vpop.permute.xlu1 %1007 }
 0xd10   : > { %v1004_v23 = vpop.permute.xlu1 %1003 }
 0xd11   : > { %v1006_v42 = vmul.f32 %v1004_v23, %v978_v25 }
 0xd13   : > { %v1032_v50 = vrot.slane %v1006_v42, %v1885_v62 }
 0xd14   : > { %v1027_v15 = vpop.permute.xlu1 %1026 }
 0xd15   : > { %v1034_v18 = vmul.f32 %v1032_v50, %v1027_v15 }
 0xd17   : > { %v1036_v53 = vsub.f32 %v978_v25, %v1034_v18 }
 0xd19   : > { %1466 = vrcp.f32 %v1036_v53  ;;  %v1076_v59 = vsub.f32 %v1036_v53, %v1282_v57 }
 0xd23   : > { %v1467_v55 = vpop.eup %1466 }
 0xd54   : > { %v994_v24 = vpop.permute.xlu0 %993 }
 0xd55   : > { %v998_v43 = vsub.f32 %v940_v11, %v994_v24 }
 0xd57   : > { %v1010_v47 = vmul.f32 %v1008_v41, %v998_v43 }
 0xd59   : > { %v1040_v51 = vrot.slane %v1010_v47, %v1885_v62  ;;  %v1613_v62 = vmov 14  }
 0xd5b   : > { %1042 = vrot.lane.b32.xlu0 %v1040_v51, %s1611_s10 }
 0xd65   : > { %v848_v54 = vpop.permute.xlu0 %847 }
 0xd66   : > { %v859_v6 = vmul.f32 %v1981_v37, %v848_v54 }
 0xd68   : > { %v2047_v9 = vsub.f32 %v2039_v40, %v859_v6 }
 0xd6a   : > { %905 = vperm.xlu1 %1431, %v2047_v9  }
 0xd6e   : > { %1065 = vrot.lane.b32.xlu1 %v1467_v55, %s1612_s15 }
 0xd6f   : > { %1433 = vset.pattern.permute.xlu1 %v1613_v62 }
 0xd72   : > { %1061 = vperm.xlu1 %1433, %v1467_v55  }
 0xd76   : > { %1084 = vperm.xlu1 %1433, %v1076_v59  }
 0xd7a   : > { %1434 = vset.pattern.permute.xlu1 %v1608_v12 }
 0xdcd   : > { %v1043_v37 = vpop.permute.xlu0 %1042 }
 0xdce   : > { %v1046_v1 = vmul.f32 %v1043_v37, %v1018_v32 }
 0xdd0   : > { %1051 = vrot.lane.b32.xlu0 %v1046_v1, %s1610_s9 }
 0xde9   : > { %v906_v14 = vpop.permute.xlu1 %905 }
 0xdea   : > { %v917_v28 = vmul.f32 %v2008_v60, %v906_v14  ;;  %v1151_v14 = vld [vmem:[%s1744_s6 + $0x8] sm:$0xff] }
 0xdec   : > { %v919_v58 = vsub.f32 %v2047_v9, %v917_v28  ;;  %v1150_v28 = vld [vmem:[%s1744_s6] sm:$0xff] }
 0xded   : > { %v1066_v13 = vpop.permute.xlu1 %1065 }
 0xdee   : > { %963 = vperm.xlu0 %1432, %v919_v58   ;;  %v987_v32 = vmul.f32 %v2033_v34, %v919_v58  ;;  %v929_v34 = vmul.f32 %v2011_v4, %v2047_v9 }
 0xdf1   : > { %v1062_v56 = vpop.permute.xlu1 %1061 }
 0xdf2   : > { %1435 = vset.pattern.permute.xlu0 %v1613_v62  ;;  %v1064_v12 = vmul.f32 %v1062_v56, %v1036_v53 }
 0xdf4   : > { %v1090_v17 = vrot.slane %v1064_v12, %v1902_v36 }
 0xdf5   : > { %v1085_v11 = vpop.permute.xlu1 %1084 }
 0xdf6   : > { %v1092_v0 = vmul.f32 %v1090_v17, %v1085_v11 }
 0xdf8   : > { %v1094_v48 = vsub.f32 %v1036_v53, %v1092_v0 }
 0xdfa   : > { %1468 = vrcp.f32 %v1094_v48 }
 0xe04   : > { %v1469_v22 = vpop.eup %1468 }
 0xe42   : > { %v1052_v16 = vpop.permute.xlu0 %1051 }
 0xe43   : > { %v1056_v44 = vsub.f32 %v998_v43, %v1052_v16 }
 0xe45   : > { %v1068_v45 = vmul.f32 %v1066_v13, %v1056_v44 }
 0xe47   : > { %v1098_v10 = vrot.slane %v1068_v45, %v1902_v36 }
 0xe49   : > { %1100 = vrot.lane.b32.xlu0 %v1098_v10, %s1614_s17 }
 0xe6d   : > { %v964_v60 = vpop.permute.xlu0 %963 }
 0xe6e   : > { %v975_v38 = vmul.f32 %v2026_v31, %v964_v60  ;;  %v871_v31 = vmul.f32 %v1987_v46, %v2039_v40  ;;  %v813_v46 = vmul.f32 %v1973_v21, %v2021_v5 }
 0xe70   : > { %v977_v7 = vsub.f32 %v919_v58, %v975_v38 }
 0xe72   : > { %1021 = vperm.xlu1 %1434, %v977_v7   ;;  %v1045_v40 = vmul.f32 %v1043_v37, %v977_v7 }
 0xe76   : > { %1118 = vrot.lane.b32.xlu1 %v1469_v22, %s1615_s18 }
 0xe77   : > { %1436 = vset.pattern.permute.xlu1 %v1571_v3 }
 0xebb   : > { %v1101_v52 = vpop.permute.xlu0 %1100 }
 0xebc   : > { %v1104_v19 = vmul.f32 %v1101_v52, %v1076_v59 }
 0xebe   : > { %1109 = vrot.lane.b32.xlu0 %v1104_v19, %s1612_s15 }
 0xef1   : > { %v1022_v36 = vpop.permute.xlu1 %1021 }
 0xef2   : > { %v1033_v25 = vmul.f32 %v1032_v50, %v1022_v36 }
 0xef4   : > { %v1035_v26 = vsub.f32 %v977_v7, %v1033_v25 }
 0xef5   : > { %v1119_v41 = vpop.permute.xlu1 %1118 }
 0xef6   : > { %1079 = vperm.xlu0 %1435, %v1035_v26   ;;  %v1103_v30 = vmul.f32 %v1101_v52, %v1035_v26 }
 0xefa   : > { %759 = vrot.lane.b32.xlu0 %v755_v27, %s1595_s26  ;;  %s1188_s26 = sshll.u32 %s161_s25, 4  ;;  %s2099_s26 = int_to_ptr.vmem [resolvable:$true] %s1188_s26 }
 0xefb   : > { %1437 = vset.pattern.permute.xlu0 %v1571_v3  ;;  %v697_v3 = vmul.f32 %v1943_v20, %v1994_v49  ;;  %v1283_v20 = vsel %vm1123_vm4, 1.0, %v1572_v8 }
 0xefc   : > { %v1129_v42 = vsub.f32 %v1094_v48, %v1283_v20 }
 0xefe   : > { %875 = vrot.lane.b32.xlu0 %v871_v31, %s1601_s29  ;;  %s1500_s29 = scalar_lea.vmem %s2099_s26, 16 }
 0xeff   : > { %p1501_p6 = scmp.ne.s32.totalorder %s2099_s26, %s1500_s29 }
 0xf01   : > { %p1502_p12 = pnand %p1501_p6, %p2150_p11 }
 0xf02   : > { %991 = vrot.lane.b32.xlu0 %v987_v32, %s1607_s7 }
 0xf03   : > { %p1503_p13 = pneg %p1502_p12 }
 0xf06   : > { %1107 = vrot.lane.b32.xlu0 %v1103_v30, %s1612_s15 }
 0xf30   : > { %v1110_v35 = vpop.permute.xlu0 %1109 }
 0xf31   : > { %v1114_v39 = vsub.f32 %v1056_v44, %v1110_v35 }
 0xf33   : > { %v1121_v61 = vmul.f32 %v1119_v41, %v1114_v39 }
 0xf35   : > { %v1133_v29 = vrot.slane %v1121_v61, %v1924_v2 }
 0xf37   : > { %1135 = vrot.lane.b32.xlu1 %v1133_v29, %s1616_s20 }
 0xf3b   : > { %701 = vrot.lane.b32.xlu1 %v697_v3, %s1592_s24  ;;  %s1284_s24 = sshll.u32 %s1657_s0, 4  ;;  %s1617_s0 = smov [#allocation6]  }
 0xf3c   : > { %s1504_s3 = sshll.u32 %s1617_s0, 4  ;;  %s1505_s3 = int_to_ptr.vmem [resolvable:$false] %s1504_s3 }
 0xf3d   : > { %p1507_p8 = scmp.lt.s32.totalorder %s2099_s26, %s1505_s3 }
 0xf3f   : > { %817 = vrot.lane.b32.xlu1 %v813_v46, %s1598_s30  ;;  %s2097_s30 = scalar_lea.hbm %s2143_s2, %s1284_s24 }
 0xf43   : > { %933 = vrot.lane.b32.xlu1 %v929_v34, %s1604_s4  ;;  %s1506_s4 = scalar_lea.vmem %s1505_s3, 32 }
 0xf44   : > { %p1508_p10 = scmp.lt.s32.totalorder %s1506_s4, %s1500_s29 }
 0xf46   : > { %p1509_p0 = por %p1508_p10, %p1507_p8 }
 0xf47   : > { %1049 = vrot.lane.b32.xlu1 %v1045_v40, %s1610_s9 }
 0xf48   : > { %p1510_p2 = pnand %p1509_p0, %p1503_p13 }
 0xf75   : > { %v1080_v2 = vpop.permute.xlu0 %1079 }
 0xf76   : > { %v1091_v23 = vmul.f32 %v1090_v17, %v1080_v2 }
 0xf78   : > { %v1093_v49 = vsub.f32 %v1035_v26, %v1091_v23 }
 0xf79   : > { %v760_v50 = vpop.permute.xlu0 %759 }
 0xf7d   : > { %v876_v63 = vpop.permute.xlu0 %875 }
 0xf81   : > { %v992_v54 = vpop.permute.xlu0 %991 }
 0xf85   : > { %v1108_v62 = vpop.permute.xlu0 %1107 }
 0xfa9   : > { %v1136_v24 = vpop.permute.xlu1 %1135 }
 0xfaa   : > { %v1138_v21 = vmul.f32 %v1136_v24, %v1093_v49  ;;  %v1139_v5 = vmul.f32 %v1136_v24, %v1129_v42 }
 0xfac   : > { %1144 = vrot.lane.b32.xlu0 %v1139_v5, %s1615_s18  ;;  %1142 = vrot.lane.b32.xlu1 %v1138_v21, %s1615_s18 }
 0xfad   : > { %v702_v4 = vpop.permute.xlu1 %701 }
 0xfae   : > { %v707_v43 = vsub.f32 %v1921_v33, %v702_v4 }
 0xfb0   : > { %v765_v47 = vsub.f32 %v707_v43, %v760_v50 }
 0xfb1   : > { %v818_v15 = vpop.permute.xlu1 %817 }
 0xfb2   : > { %v823_v51 = vsub.f32 %v765_v47, %v818_v15 }
 0xfb4   : > { %v881_v18 = vsub.f32 %v823_v51, %v876_v63 }
 0xfb5   : > { %v934_v8 = vpop.permute.xlu1 %933 }
 0xfb6   : > { %v939_v53 = vsub.f32 %v881_v18, %v934_v8 }
 0xfb8   : > { %v997_v6 = vsub.f32 %v939_v53, %v992_v54 }
 0xfb9   : > { %v1050_v9 = vpop.permute.xlu1 %1049 }
 0xfba   : > { %v1055_v55 = vsub.f32 %v997_v6, %v1050_v9 }
 0xfbc   : > { %v1113_v57 = vsub.f32 %v1055_v55, %v1108_v62 }
0x101e   : > { %v1145_v59 = vpop.permute.xlu0 %1144  ;;  %v1143_v37 = vpop.permute.xlu1 %1142 }
0x101f   : > { %v1149_v1 = vsub.f32 %v1114_v39, %v1145_v59  ;;  %v1148_v33 = vsub.f32 %v1113_v57, %v1143_v37 }
0x1021   : > { %1159 = vperm.xlu0 %1437, %v1149_v1   ;;  %1154 = vperm.xlu1 %1436, %v1148_v33  }
0x10a0   : > { %v1160_v58 = vpop.permute.xlu0 %1159  ;;  %v1155_v16 = vpop.permute.xlu1 %1154 }
0x10a1   : > { %v1163_v44 = vmul.f32 %v1160_v58, %v1151_v14  ;;  %v1162_v13 = vmul.f32 %v1155_v16, %v1150_v28 }
0x10a3   : > { %v1165_v45 = vsel %vm179_vm0, %v1163_v44, 0.0  ;;  %v1164_v10 = vsel %vm179_vm0, %v1162_v13, 0.0 }
0x10a4   : > { %v1166_v56 = vadd.f32 %v1165_v45, %v1164_v10 }
0x10a6   : > { %v1167_v12 = vrot.slane %v1166_v56, 4 }
0x10a8   : > { %v1168_v17 = vadd.f32 %v1167_v12, %v1166_v56 }
0x10aa   : > { %v1169_v11 = vrot.slane %v1168_v17, 2 }
0x10ac   : > { %v1170_v0 = vadd.f32 %v1169_v11, %v1168_v17 }
0x10ae   : > { %v1171_v48 = vrot.slane %v1170_v0, 1 }
0x10b0   : > { %v1172_v60 = vadd.f32 %v1171_v48, %v1170_v0 }
0x10b2   : > { %1174 = vst.msk [vmem:[%s161_s25] sm:$0x1] %vm1173_vm5, %v1172_v60 }
0x10b3   : > { %1513 = shalt.err (!%p1510_p2)
}
0x10b4   : > { %s1514_s27 = scalar_lea.hbm %s2097_s30, 16  ;;  %s1518_s8 = scalar_lea.hbm %s2143_s2, 32 }
0x10b5   : > { %p1515_p4 = scmp.ne.s32.totalorder %s2097_s30, %s1514_s27  ;;  %p1519_p9 = scmp.lt.u32.totalorder %s2097_s30, %s2143_s2 }
0x10b6   : > { %p1520_p1 = scmp.lt.u32.totalorder %s1518_s8, %s1514_s27  ;;  %p1522_p6 = scmp.lt.u32.totalorder %s1514_s27, %s2097_s30 }
0x10b7   : > { %p1516_p5 = pnand %p1515_p4, %p2150_p11 }
0x10b8   : > { %p1521_p3 = por %p1520_p1, %p1519_p9 }
0x10b9   : > { %p1517_p7 = pneg %p1516_p5 }
0x10ba   : > { %p1523_p12 = por %p1522_p6, %p1521_p3 }
0x10bc   : > { %p1524_p13 = pnand %p1523_p12, %p1517_p7 }
0x10be   : > { %1527 = shalt.err (!%p1524_p13)
}
0x10bf   : > { %1307 = dma.vmem_to_hbm [thread:$0]  (%p2150_p11), %s2099_s26, 16, %s2097_s30, %s1176_s21  }
0x10c0 PF: > { %s1200_s15 = sand.u32 1, %s1554_s11   ;;  %p2151_p8 = scmp.ne.s32.totalorder %s2148_s23, 0 }
0x10c1   : > { %p2152_p10 = scmp.ge.s32.totalorder %s1566_s14, 2  ;;  %s1201_s17 = scalar_lea.sflag [#allocation5], %s1200_s15 }
0x10c3   : > { %p1314_p0 = pnand %p2152_p10, %p2151_p8 }
0x10c5   : > { %1549 = dma.done.wait (!%p1314_p0), %s1201_s17, 16  }
0x10c6   : > { %1551 = vsyncadd (!%p1314_p0), %s1201_s17, 4294967280  ;;  %p16_p2 = scmp.ge.s32.totalorder %s1661_s16, 4   ;;  %s2153_s11 = smov %s1558_s12 }
0x10c7   : > { %s2154_s12 = smov %s1562_s13  ;;  %s2155_s13 = smov %s1673_s19 }
0x10c8   : > { %s2156_s14 = smov %s1661_s16  ;;  %18 = sbr.rel (!%p16_p2) target bundleno = 7 (0x7), region = 73 }
0x10cf   :  { %1205 = vsyncpa [#allocation4], 1 }
0x10d0   :  { %1207 = vsyncpa [#allocation4 + $0x1], 1 }
0x10d1   :  { %1208 = vsyncpa [#allocation5], 1 }
0x10d2   :  { %1210 = vsyncpa [#allocation5 + $0x1], 1 }

</bundles_post_ra>
